<compile_context>
chip_gen: v6e
topology: v6e:2x2x1
jax: 0.10.0
libtpu: 0.0.40
codegen_flags: <defaults>
</compile_context>

<pallas_src>
import functools

import jax
import jax.numpy as jnp
from jax import lax
from jax.experimental import pallas as pl
from jax.experimental.pallas import tpu as pltpu

DP = 128   # padded (lane-dense) feature width


def mxdot(a, b):
    """MXU matmul: bf16 operands, f32 accumulation."""
    return jnp.dot(a.astype(jnp.bfloat16), b.astype(jnp.bfloat16),
                   preferred_element_type=jnp.float32)


def pick_edge_tile():
    """128-edge blocks on 2-TC (v7x-class) chips; one bigger block on 1-TC chips."""
    try:
        kind = jax.devices()[0].device_kind.lower()
    except Exception:
        kind = ""
    return 128 if "v7" in kind else 256


# ------------------------------ fused kernel ------------------------------
def graphrec_kernel(eu_ref, ev_ref,
                    u_ref, v_ref, a_soc_ref, a_rated_ref, a_rates_ref,
                    ws_su_ref, b_su_ref, wn_soc_ref, wn_rated_ref,
                    ws_rates_ref, wn_rates_ref, b_rates_ref,
                    w_ur1_ref, b_ur1_ref, w_ur2_ref, b_ur2_ref,
                    w_vr1_ref, b_vr1_ref, w_vr2_ref, b_vr2_ref,
                    w_uv1_ref, b_uv1_ref, w_uv2_ref, b_uv2_ref,
                    w_uv3_ref, b_uv3_ref,
                    out_ref):
    U = u_ref[...]                       # (NU, DP) f32
    V = v_ref[...]                       # (NV, DP) f32
    nu = U.shape[0]
    nv = V.shape[0]
    te = eu_ref.shape[1]

    # --- node stage (recomputed per edge block; keeps the grid embarrassingly parallel) ---
    # HeteroGraphConv({social,rates,rated} -> SAGEConv('mean')), aggregate='sum'.
    # Neighbor means stay f32 so the 1/deg weights are not bf16-quantized.
    agg_soc = jnp.dot(a_soc_ref[...], U, preferred_element_type=jnp.float32)
    agg_rated = jnp.dot(a_rated_ref[...], V, preferred_element_type=jnp.float32)
    agg_rates = jnp.dot(a_rates_ref[...], U, preferred_element_type=jnp.float32)

    # user self-loop weights of 'social' and 'rated' are pre-fused (ws_su, b_su)
    h_u = (mxdot(U, ws_su_ref[...])
           + mxdot(agg_soc, wn_soc_ref[...])
           + mxdot(agg_rated, wn_rated_ref[...])
           + b_su_ref[...])
    h_v = (mxdot(V, ws_rates_ref[...])
           + mxdot(agg_rates, wn_rates_ref[...])
           + b_rates_ref[...])

    # user tower: w_ur2(relu(bn1(w_ur1(h_u))))   [bn folded, dropout=identity]
    x_u = jnp.maximum(mxdot(h_u, w_ur1_ref[...]) + b_ur1_ref[...], 0.0)
    x_u = mxdot(x_u, w_ur2_ref[...]) + b_ur2_ref[...]               # (NU, DP) f32
    # item tower: w_vr2(relu(bn2(w_vr1(h_v))))
    x_v = jnp.maximum(mxdot(h_v, w_vr1_ref[...]) + b_vr1_ref[...], 0.0)
    x_v = mxdot(x_v, w_vr2_ref[...]) + b_vr2_ref[...]               # (NV, DP) f32

    # --- edge stage: vectorized one-hot gather on the MXU (replaces scalar loop) ---
    eu = eu_ref[...]                                                # (1, te) int32
    ev = ev_ref[...]
    oh_u = (lax.broadcasted_iota(jnp.int32, (nu, te), 0) == eu).astype(jnp.float32)
    oh_v = (lax.broadcasted_iota(jnp.int32, (nv, te), 0) == ev).astype(jnp.float32)
    # (nu, te)^T @ (nu, DP) -> (te, DP); exact row selection kept in f32
    gu = lax.dot_general(oh_u, x_u, (((0,), (0,)), ((), ())),
                         preferred_element_type=jnp.float32)
    gv = lax.dot_general(oh_v, x_v, (((0,), (0,)), ((), ())),
                         preferred_element_type=jnp.float32)

    # apply_edges(u_mul_v) + rating MLP (bn3/bn4 folded, dropout=identity); f32 epilogues
    h_e = gu * gv                                                   # (te, DP) f32
    x = jnp.maximum(mxdot(h_e, w_uv1_ref[...]) + b_uv1_ref[...], 0.0)
    x = jnp.maximum(mxdot(x, w_uv2_ref[...]) + b_uv2_ref[...], 0.0)
    # final 16->1 Linear as a lane-dense (1, te) score row: bf16 rhs-transposed contraction
    s = lax.dot_general(w_uv3_ref[...], x.astype(jnp.bfloat16),
                        (((1,), (1,)), ((), ())),
                        preferred_element_type=jnp.float32) + b_uv3_ref[0, 0]
    out_ref[0] = s                                                  # (1, te)


# ---------------------------------- wrapper ------------------------------------
def graphrec_forward(eu_blk, ev_blk, node_args, edge_args, num_edges):
    n_blk, te = eu_blk.shape

    def full(shape):
        return pl.BlockSpec(shape, lambda i: (0,) * len(shape))

    edge_idx_spec = pl.BlockSpec((1, te), lambda i: (i, 0))
    in_specs = ([edge_idx_spec, edge_idx_spec]
                + [full(a.shape) for a in node_args]
                + [full(a.shape) for a in edge_args[:-1]]
                + [pl.BlockSpec(memory_space=pltpu.MemorySpace.SMEM)])   # b_uv3 scalar

    scores = pl.pallas_call(
        graphrec_kernel,
        out_shape=jax.ShapeDtypeStruct((n_blk, 1, te), jnp.float32),
        grid_spec=pltpu.PrefetchScalarGridSpec(
            num_scalar_prefetch=0,
            grid=(n_blk,),
            in_specs=in_specs,
            out_specs=pl.BlockSpec((1, 1, te), lambda i: (i, 0, 0)),
        ),
        compiler_params=pltpu.CompilerParams(dimension_semantics=("parallel",)),
    )(eu_blk, ev_blk, *node_args, *edge_args)

    return scores.reshape(-1)[:num_edges]      # matches scores.squeeze() in PyTorch


# --------------------------- pure-JAX reference (f32) ---------------------------
def graphrec_reference(raw):
    (U, V, a_soc, a_rated, a_rates, e_user, e_item,
     ws_soc, wn_soc, b_soc, ws_rated, wn_rated, b_rated,
     ws_rates, wn_rates, b_rates,
     w_ur1, b_ur1, bn1_s, bn1_b, w_ur2, b_ur2,
     w_vr1, b_vr1, bn2_s, bn2_b, w_vr2, b_vr2,
     w_uv1, b_uv1, bn3_s, bn3_b, w_uv2, b_uv2, bn4_s, bn4_b,
     w_uv3, b_uv3) = raw
    h_u = (U @ ws_soc + (a_soc @ U) @ wn_soc + b_soc
           + U @ ws_rated + (a_rated @ V) @ wn_rated + b_rated)
    h_v = V @ ws_rates + (a_rates @ U) @ wn_rates + b_rates
    x_u = jnp.maximum((h_u @ w_ur1 + b_ur1) * bn1_s + bn1_b, 0.0) @ w_ur2 + b_ur2
    x_v = jnp.maximum((h_v @ w_vr1 + b_vr1) * bn2_s + bn2_b, 0.0) @ w_vr2 + b_vr2
    h_e = x_u[e_user] * x_v[e_item]
    x = jnp.maximum((h_e @ w_uv1 + b_uv1) * bn3_s + bn3_b, 0.0)
    x = jnp.maximum((x @ w_uv2 + b_uv2) * bn4_s + bn4_b, 0.0)
    return (x @ w_uv3 + b_uv3).squeeze(-1)


# -------------------------------- setup helpers ---------------------------------
def linear_params(key, in_dim, out_dim):
    """nn.Linear-style init; weight pre-transposed as (in_dim, out_dim)."""
    k1, k2 = jax.random.split(key)
    bound = 1.0 / float(in_dim) ** 0.5
    w = jax.random.uniform(k1, (in_dim, out_dim), jnp.float32, -bound, bound)
    b = jax.random.uniform(k2, (1, out_dim), jnp.float32, -bound, bound)
    return w, b


def sage_params(key, dim):
    k1, k2, k3 = jax.random.split(key, 3)
    w_self, _ = linear_params(k1, dim, dim)
    w_neigh, _ = linear_params(k2, dim, dim)
    bias = jax.random.uniform(k3, (1, dim), jnp.float32, -0.1, 0.1)
    return w_self, w_neigh, bias


def bn_fold(dim, eps=1e-5):
    """Eval-mode BatchNorm1d (gamma=1, beta=0, mean=0, var=1) -> per-feature scale/shift."""
    gamma = jnp.ones((dim,), jnp.float32)
    beta = jnp.zeros((dim,), jnp.float32)
    running_mean = jnp.zeros((dim,), jnp.float32)
    running_var = jnp.ones((dim,), jnp.float32)
    scale = gamma / jnp.sqrt(running_var + eps)
    shift = beta - running_mean * scale
    return scale.reshape(1, dim), shift.reshape(1, dim)


def fold_bn_into_linear(w, b, scale, shift):
    """(x @ w + b) * scale + shift  ==  x @ (w*scale) + (b*scale + shift)."""
    return w * scale, b * scale + shift


def norm_adj(dst_idx, src_idx, n_dst, n_src):
    a = jnp.zeros((n_dst, n_src), jnp.float32).at[dst_idx, src_idx].set(1.0)
    deg = a.sum(axis=1, keepdims=True)
    return a / jnp.maximum(deg, 1.0)


def pad_to(x, rows, cols):
    out = jnp.zeros((rows, cols), x.dtype)
    return out.at[: x.shape[0], : x.shape[1]].set(x)


# ------------------------------------ main ---------------------------------------
if __name__ == "__main__":
    D = 32        # embed_dim (logical)
    NU = 32       # num_users
    NV = 32       # num_items
    E = 200       # ('user','rates','item') edges
    E_SOC = 64    # ('user','social','user') edges

    key = jax.random.PRNGKey(0)
    ks = jax.random.split(key, 16)

    # node embeddings (nn.Embedding default: N(0,1))
    u_emb = jax.random.normal(ks[0], (NU, D), jnp.float32)
    v_emb = jax.random.normal(ks[1], (NV, D), jnp.float32)

    # 'rates' edges (unique user->item pairs); 'rated' is the reverse relation
    flat = jax.random.choice(ks[2], NU * NV, (E,), replace=False)
    e_user = (flat // NV).astype(jnp.int32)
    e_item = (flat % NV).astype(jnp.int32)
    a_rates = norm_adj(e_item, e_user, NV, NU)     # dst=item, src=user
    a_rated = norm_adj(e_user, e_item, NU, NV)     # dst=user, src=item

    # 'social' edges (unique user->user pairs)
    soc_flat = jax.random.choice(ks[3], NU * NU, (E_SOC,), replace=False)
    a_soc = norm_adj((soc_flat // NU).astype(jnp.int32),
                     (soc_flat % NU).astype(jnp.int32), NU, NU)

    # SAGEConv parameters for the three relations
    ws_soc, wn_soc, b_soc = sage_params(ks[4], D)
    ws_rated, wn_rated, b_rated = sage_params(ks[5], D)
    ws_rates, wn_rates, b_rates = sage_params(ks[6], D)

    # towers + rating MLP
    w_ur1, b_ur1 = linear_params(ks[7], D, D)
    w_ur2, b_ur2 = linear_params(ks[8], D, D)
    w_vr1, b_vr1 = linear_params(ks[9], D, D)
    w_vr2, b_vr2 = linear_params(ks[10], D, D)
    w_uv1, b_uv1 = linear_params(ks[11], D, D)
    w_uv2, b_uv2 = linear_params(ks[12], D, 16)
    w_uv3, b_uv3 = linear_params(ks[13], 16, 1)
    bn1_s, bn1_b = bn_fold(D)
    bn2_s, bn2_b = bn_fold(D)
    bn3_s, bn3_b = bn_fold(D)
    bn4_s, bn4_b = bn_fold(16)

    # ---- perf preprocessing (exact algebra, done once outside the kernel) ----
    ws_su = ws_soc + ws_rated                 # fuse user self-loop matmuls
    b_su = b_soc + b_rated
    w_ur1f, b_ur1f = fold_bn_into_linear(w_ur1, b_ur1, bn1_s, bn1_b)
    w_vr1f, b_vr1f = fold_bn_into_linear(w_vr1, b_vr1, bn2_s, bn2_b)
    w_uv1f, b_uv1f = fold_bn_into_linear(w_uv1, b_uv1, bn3_s, bn3_b)
    w_uv2f, b_uv2f = fold_bn_into_linear(w_uv2, b_uv2, bn4_s, bn4_b)

    wpad = lambda w: pad_to(w, DP, DP).astype(jnp.bfloat16)   # matmul weights -> bf16
    bpad = lambda b: pad_to(b, 1, DP)                         # biases stay f32

    node_args = (
        pad_to(u_emb, NU, DP),                 # embeddings stay f32 (exact aggregation)
        pad_to(v_emb, NV, DP),
        a_soc, a_rated, a_rates,               # adjacencies stay f32 (exact 1/deg means)
        wpad(ws_su), bpad(b_su), wpad(wn_soc), wpad(wn_rated),
        wpad(ws_rates), wpad(wn_rates), bpad(b_rates),
        wpad(w_ur1f), bpad(b_ur1f), wpad(w_ur2), bpad(b_ur2),
        wpad(w_vr1f), bpad(b_vr1f), wpad(w_vr2), bpad(b_vr2),
    )
    edge_args = (
        wpad(w_uv1f), bpad(b_uv1f),
        wpad(w_uv2f), bpad(b_uv2f),
        pad_to(w_uv3.T, 1, DP).astype(jnp.bfloat16),   # (1, DP) row
        b_uv3.reshape(1, 1),                           # scalar bias (SMEM)
    )

    # pad edge lists to whole TE-edge blocks (padding edges gather node 0 and are sliced off)
    TE = pick_edge_tile()
    n_blk = -(-E // TE)
    e_pad = n_blk * TE
    eu_blk = jnp.zeros((e_pad,), jnp.int32).at[:E].set(e_user).reshape(n_blk, TE)
    ev_blk = jnp.zeros((e_pad,), jnp.int32).at[:E].set(e_item).reshape(n_blk, TE)

    fwd = jax.jit(functools.partial(graphrec_forward, num_edges=E))
    scores = jax.block_until_ready(fwd(eu_blk, ev_blk, node_args, edge_args))

    raw = (u_emb, v_emb, a_soc, a_rated, a_rates, e_user, e_item,
           ws_soc, wn_soc, b_soc, ws_rated, wn_rated, b_rated,
           ws_rates, wn_rates, b_rates,
           w_ur1, b_ur1, bn1_s, bn1_b, w_ur2, b_ur2,
           w_vr1, b_vr1, bn2_s, bn2_b, w_vr2, b_vr2,
           w_uv1, b_uv1, bn3_s, bn3_b, w_uv2, b_uv2, bn4_s, bn4_b,
           w_uv3, b_uv3)
    ref = jax.block_until_ready(graphrec_reference(raw))

    assert scores.shape == (E,), scores.shape
    max_err = float(jnp.max(jnp.abs(scores - ref)))
    # kernel uses bf16 matmul operands (f32 accumulation); reference is pure f32,
    # so the tolerance is loosened accordingly (observed error is far smaller).
    assert max_err < 2e-2, max_err
    print("KERNEL_OK")
</pallas_src>

<mosaic_0001>
module attributes {stable_mosaic.version = 11 : i64} {
  func.func @graphrec_kernel(%arg0: i32, %arg1: memref<1x256xi32, #tpu.memory_space<vmem>>, %arg2: memref<1x256xi32, #tpu.memory_space<vmem>>, %arg3: memref<32x128xf32, #tpu.memory_space<vmem>>, %arg4: memref<32x128xf32, #tpu.memory_space<vmem>>, %arg5: memref<32x32xf32, #tpu.memory_space<vmem>>, %arg6: memref<32x32xf32, #tpu.memory_space<vmem>>, %arg7: memref<32x32xf32, #tpu.memory_space<vmem>>, %arg8: memref<128x128xbf16, #tpu.memory_space<vmem>>, %arg9: memref<1x128xf32, #tpu.memory_space<vmem>>, %arg10: memref<128x128xbf16, #tpu.memory_space<vmem>>, %arg11: memref<128x128xbf16, #tpu.memory_space<vmem>>, %arg12: memref<128x128xbf16, #tpu.memory_space<vmem>>, %arg13: memref<128x128xbf16, #tpu.memory_space<vmem>>, %arg14: memref<1x128xf32, #tpu.memory_space<vmem>>, %arg15: memref<128x128xbf16, #tpu.memory_space<vmem>>, %arg16: memref<1x128xf32, #tpu.memory_space<vmem>>, %arg17: memref<128x128xbf16, #tpu.memory_space<vmem>>, %arg18: memref<1x128xf32, #tpu.memory_space<vmem>>, %arg19: memref<128x128xbf16, #tpu.memory_space<vmem>>, %arg20: memref<1x128xf32, #tpu.memory_space<vmem>>, %arg21: memref<128x128xbf16, #tpu.memory_space<vmem>>, %arg22: memref<1x128xf32, #tpu.memory_space<vmem>>, %arg23: memref<128x128xbf16, #tpu.memory_space<vmem>>, %arg24: memref<1x128xf32, #tpu.memory_space<vmem>>, %arg25: memref<128x128xbf16, #tpu.memory_space<vmem>>, %arg26: memref<1x128xf32, #tpu.memory_space<vmem>>, %arg27: memref<1x128xbf16, #tpu.memory_space<vmem>>, %arg28: memref<1x1xf32, #tpu.memory_space<smem>>, %arg29: memref<1x1x256xf32, #tpu.memory_space<vmem>>) attributes {dimension_semantics = [#tpu.dimension_semantics<parallel>], iteration_bounds = array<i64: 1>, scalar_prefetch = 0 : i64, scratch_operands = 0 : i64, tpu.core_type = #tpu.core_type<tc>, window_params = [{transform_indices = @transform_0, window_bounds = array<i64: 1, 256>}, {transform_indices = @transform_1, window_bounds = array<i64: 1, 256>}, {pipeline_mode = #tpu.pipeline_mode<synchronous>, transform_indices = @transform_2, window_bounds = array<i64: 32, 128>}, {pipeline_mode = #tpu.pipeline_mode<synchronous>, transform_indices = @transform_3, window_bounds = array<i64: 32, 128>}, {pipeline_mode = #tpu.pipeline_mode<synchronous>, transform_indices = @transform_4, window_bounds = array<i64: 32, 32>}, {pipeline_mode = #tpu.pipeline_mode<synchronous>, transform_indices = @transform_5, window_bounds = array<i64: 32, 32>}, {pipeline_mode = #tpu.pipeline_mode<synchronous>, transform_indices = @transform_6, window_bounds = array<i64: 32, 32>}, {pipeline_mode = #tpu.pipeline_mode<synchronous>, transform_indices = @transform_7, window_bounds = array<i64: 128, 128>}, {pipeline_mode = #tpu.pipeline_mode<synchronous>, transform_indices = @transform_8, window_bounds = array<i64: 1, 128>}, {pipeline_mode = #tpu.pipeline_mode<synchronous>, transform_indices = @transform_9, window_bounds = array<i64: 128, 128>}, {pipeline_mode = #tpu.pipeline_mode<synchronous>, transform_indices = @transform_10, window_bounds = array<i64: 128, 128>}, {pipeline_mode = #tpu.pipeline_mode<synchronous>, transform_indices = @transform_11, window_bounds = array<i64: 128, 128>}, {pipeline_mode = #tpu.pipeline_mode<synchronous>, transform_indices = @transform_12, window_bounds = array<i64: 128, 128>}, {pipeline_mode = #tpu.pipeline_mode<synchronous>, transform_indices = @transform_13, window_bounds = array<i64: 1, 128>}, {pipeline_mode = #tpu.pipeline_mode<synchronous>, transform_indices = @transform_14, window_bounds = array<i64: 128, 128>}, {pipeline_mode = #tpu.pipeline_mode<synchronous>, transform_indices = @transform_15, window_bounds = array<i64: 1, 128>}, {pipeline_mode = #tpu.pipeline_mode<synchronous>, transform_indices = @transform_16, window_bounds = array<i64: 128, 128>}, {pipeline_mode = #tpu.pipeline_mode<synchronous>, transform_indices = @transform_17, window_bounds = array<i64: 1, 128>}, {pipeline_mode = #tpu.pipeline_mode<synchronous>, transform_indices = @transform_18, window_bounds = array<i64: 128, 128>}, {pipeline_mode = #tpu.pipeline_mode<synchronous>, transform_indices = @transform_19, window_bounds = array<i64: 1, 128>}, {pipeline_mode = #tpu.pipeline_mode<synchronous>, transform_indices = @transform_20, window_bounds = array<i64: 128, 128>}, {pipeline_mode = #tpu.pipeline_mode<synchronous>, transform_indices = @transform_21, window_bounds = array<i64: 1, 128>}, {pipeline_mode = #tpu.pipeline_mode<synchronous>, transform_indices = @transform_22, window_bounds = array<i64: 128, 128>}, {pipeline_mode = #tpu.pipeline_mode<synchronous>, transform_indices = @transform_23, window_bounds = array<i64: 1, 128>}, {pipeline_mode = #tpu.pipeline_mode<synchronous>, transform_indices = @transform_24, window_bounds = array<i64: 128, 128>}, {pipeline_mode = #tpu.pipeline_mode<synchronous>, transform_indices = @transform_25, window_bounds = array<i64: 1, 128>}, {pipeline_mode = #tpu.pipeline_mode<synchronous>, transform_indices = @transform_26, window_bounds = array<i64: 1, 128>}, {transform_indices = @transform_27, window_bounds = array<i64: 1, 1>}, {transform_indices = @transform_28, window_bounds = array<i64: 1, 1, 256>}]} {
    %c0 = arith.constant 0 : index
    %c0_0 = arith.constant 0 : index
    %0 = vector.load %arg3[%c0, %c0_0] : memref<32x128xf32, #tpu.memory_space<vmem>>, vector<32x128xf32>
    %c0_1 = arith.constant 0 : index
    %c0_2 = arith.constant 0 : index
    %1 = vector.load %arg4[%c0_1, %c0_2] : memref<32x128xf32, #tpu.memory_space<vmem>>, vector<32x128xf32>
    %c0_3 = arith.constant 0 : index
    %c0_4 = arith.constant 0 : index
    %2 = vector.load %arg5[%c0_3, %c0_4] : memref<32x32xf32, #tpu.memory_space<vmem>>, vector<32x32xf32>
    %cst = arith.constant dense<0.000000e+00> : vector<32x128xf32>
    %3 = tpu.matmul %2, %0, %cst {dimension_numbers = #tpu.dot_dimension_numbers<[1], [0], [0], [1], [0, 0, 1, 1], [], []>} : vector<32x32xf32>, vector<32x128xf32>, vector<32x128xf32> -> vector<32x128xf32>
    %c0_5 = arith.constant 0 : index
    %c0_6 = arith.constant 0 : index
    %4 = vector.load %arg6[%c0_5, %c0_6] : memref<32x32xf32, #tpu.memory_space<vmem>>, vector<32x32xf32>
    %cst_7 = arith.constant dense<0.000000e+00> : vector<32x128xf32>
    %5 = tpu.matmul %4, %1, %cst_7 {dimension_numbers = #tpu.dot_dimension_numbers<[1], [0], [0], [1], [0, 0, 1, 1], [], []>} : vector<32x32xf32>, vector<32x128xf32>, vector<32x128xf32> -> vector<32x128xf32>
    %c0_8 = arith.constant 0 : index
    %c0_9 = arith.constant 0 : index
    %6 = vector.load %arg7[%c0_8, %c0_9] : memref<32x32xf32, #tpu.memory_space<vmem>>, vector<32x32xf32>
    %cst_10 = arith.constant dense<0.000000e+00> : vector<32x128xf32>
    %7 = tpu.matmul %6, %0, %cst_10 {dimension_numbers = #tpu.dot_dimension_numbers<[1], [0], [0], [1], [0, 0, 1, 1], [], []>} : vector<32x32xf32>, vector<32x128xf32>, vector<32x128xf32> -> vector<32x128xf32>
    %c0_11 = arith.constant 0 : index
    %c0_12 = arith.constant 0 : index
    %8 = vector.load %arg8[%c0_11, %c0_12] : memref<128x128xbf16, #tpu.memory_space<vmem>>, vector<128x128xbf16>
    %9 = arith.truncf %0 : vector<32x128xf32> to vector<32x128xbf16>
    %cst_13 = arith.constant dense<0.000000e+00> : vector<32x128xf32>
    %10 = tpu.matmul %9, %8, %cst_13 {dimension_numbers = #tpu.dot_dimension_numbers<[1], [0], [0], [1], [0, 0, 1, 1], [], []>} : vector<32x128xbf16>, vector<128x128xbf16>, vector<32x128xf32> -> vector<32x128xf32>
    %c0_14 = arith.constant 0 : index
    %c0_15 = arith.constant 0 : index
    %11 = vector.load %arg10[%c0_14, %c0_15] : memref<128x128xbf16, #tpu.memory_space<vmem>>, vector<128x128xbf16>
    %12 = arith.truncf %3 : vector<32x128xf32> to vector<32x128xbf16>
    %cst_16 = arith.constant dense<0.000000e+00> : vector<32x128xf32>
    %13 = tpu.matmul %12, %11, %cst_16 {dimension_numbers = #tpu.dot_dimension_numbers<[1], [0], [0], [1], [0, 0, 1, 1], [], []>} : vector<32x128xbf16>, vector<128x128xbf16>, vector<32x128xf32> -> vector<32x128xf32>
    %14 = arith.addf %10, %13 : vector<32x128xf32>
    %c0_17 = arith.constant 0 : index
    %c0_18 = arith.constant 0 : index
    %15 = vector.load %arg11[%c0_17, %c0_18] : memref<128x128xbf16, #tpu.memory_space<vmem>>, vector<128x128xbf16>
    %16 = arith.truncf %5 : vector<32x128xf32> to vector<32x128xbf16>
    %cst_19 = arith.constant dense<0.000000e+00> : vector<32x128xf32>
    %17 = tpu.matmul %16, %15, %cst_19 {dimension_numbers = #tpu.dot_dimension_numbers<[1], [0], [0], [1], [0, 0, 1, 1], [], []>} : vector<32x128xbf16>, vector<128x128xbf16>, vector<32x128xf32> -> vector<32x128xf32>
    %18 = arith.addf %14, %17 : vector<32x128xf32>
    %c0_20 = arith.constant 0 : index
    %c0_21 = arith.constant 0 : index
    %19 = vector.load %arg9[%c0_20, %c0_21] : memref<1x128xf32, #tpu.memory_space<vmem>>, vector<1x128xf32>
    %20 = vector.broadcast %19 : vector<1x128xf32> to vector<32x128xf32>
    %21 = arith.addf %18, %20 : vector<32x128xf32>
    %c0_22 = arith.constant 0 : index
    %c0_23 = arith.constant 0 : index
    %22 = vector.load %arg12[%c0_22, %c0_23] : memref<128x128xbf16, #tpu.memory_space<vmem>>, vector<128x128xbf16>
    %23 = arith.truncf %1 : vector<32x128xf32> to vector<32x128xbf16>
    %cst_24 = arith.constant dense<0.000000e+00> : vector<32x128xf32>
    %24 = tpu.matmul %23, %22, %cst_24 {dimension_numbers = #tpu.dot_dimension_numbers<[1], [0], [0], [1], [0, 0, 1, 1], [], []>} : vector<32x128xbf16>, vector<128x128xbf16>, vector<32x128xf32> -> vector<32x128xf32>
    %c0_25 = arith.constant 0 : index
    %c0_26 = arith.constant 0 : index
    %25 = vector.load %arg13[%c0_25, %c0_26] : memref<128x128xbf16, #tpu.memory_space<vmem>>, vector<128x128xbf16>
    %26 = arith.truncf %7 : vector<32x128xf32> to vector<32x128xbf16>
    %cst_27 = arith.constant dense<0.000000e+00> : vector<32x128xf32>
    %27 = tpu.matmul %26, %25, %cst_27 {dimension_numbers = #tpu.dot_dimension_numbers<[1], [0], [0], [1], [0, 0, 1, 1], [], []>} : vector<32x128xbf16>, vector<128x128xbf16>, vector<32x128xf32> -> vector<32x128xf32>
    %28 = arith.addf %24, %27 : vector<32x128xf32>
    %c0_28 = arith.constant 0 : index
    %c0_29 = arith.constant 0 : index
    %29 = vector.load %arg14[%c0_28, %c0_29] : memref<1x128xf32, #tpu.memory_space<vmem>>, vector<1x128xf32>
    %30 = vector.broadcast %29 : vector<1x128xf32> to vector<32x128xf32>
    %31 = arith.addf %28, %30 : vector<32x128xf32>
    %c0_30 = arith.constant 0 : index
    %c0_31 = arith.constant 0 : index
    %32 = vector.load %arg15[%c0_30, %c0_31] : memref<128x128xbf16, #tpu.memory_space<vmem>>, vector<128x128xbf16>
    %33 = arith.truncf %21 : vector<32x128xf32> to vector<32x128xbf16>
    %cst_32 = arith.constant dense<0.000000e+00> : vector<32x128xf32>
    %34 = tpu.matmul %33, %32, %cst_32 {dimension_numbers = #tpu.dot_dimension_numbers<[1], [0], [0], [1], [0, 0, 1, 1], [], []>} : vector<32x128xbf16>, vector<128x128xbf16>, vector<32x128xf32> -> vector<32x128xf32>
    %c0_33 = arith.constant 0 : index
    %c0_34 = arith.constant 0 : index
    %35 = vector.load %arg16[%c0_33, %c0_34] : memref<1x128xf32, #tpu.memory_space<vmem>>, vector<1x128xf32>
    %36 = vector.broadcast %35 : vector<1x128xf32> to vector<32x128xf32>
    %37 = arith.addf %34, %36 : vector<32x128xf32>
    %cst_35 = arith.constant 0.000000e+00 : f32
    %38 = vector.broadcast %cst_35 : f32 to vector<32x128xf32>
    %39 = arith.maximumf %37, %38 : vector<32x128xf32>
    %c0_36 = arith.constant 0 : index
    %c0_37 = arith.constant 0 : index
    %40 = vector.load %arg17[%c0_36, %c0_37] : memref<128x128xbf16, #tpu.memory_space<vmem>>, vector<128x128xbf16>
    %41 = arith.truncf %39 : vector<32x128xf32> to vector<32x128xbf16>
    %cst_38 = arith.constant dense<0.000000e+00> : vector<32x128xf32>
    %42 = tpu.matmul %41, %40, %cst_38 {dimension_numbers = #tpu.dot_dimension_numbers<[1], [0], [0], [1], [0, 0, 1, 1], [], []>} : vector<32x128xbf16>, vector<128x128xbf16>, vector<32x128xf32> -> vector<32x128xf32>
    %c0_39 = arith.constant 0 : index
    %c0_40 = arith.constant 0 : index
    %43 = vector.load %arg18[%c0_39, %c0_40] : memref<1x128xf32, #tpu.memory_space<vmem>>, vector<1x128xf32>
    %44 = vector.broadcast %43 : vector<1x128xf32> to vector<32x128xf32>
    %45 = arith.addf %42, %44 : vector<32x128xf32>
    %c0_41 = arith.constant 0 : index
    %c0_42 = arith.constant 0 : index
    %46 = vector.load %arg19[%c0_41, %c0_42] : memref<128x128xbf16, #tpu.memory_space<vmem>>, vector<128x128xbf16>
    %47 = arith.truncf %31 : vector<32x128xf32> to vector<32x128xbf16>
    %cst_43 = arith.constant dense<0.000000e+00> : vector<32x128xf32>
    %48 = tpu.matmul %47, %46, %cst_43 {dimension_numbers = #tpu.dot_dimension_numbers<[1], [0], [0], [1], [0, 0, 1, 1], [], []>} : vector<32x128xbf16>, vector<128x128xbf16>, vector<32x128xf32> -> vector<32x128xf32>
    %c0_44 = arith.constant 0 : index
    %c0_45 = arith.constant 0 : index
    %49 = vector.load %arg20[%c0_44, %c0_45] : memref<1x128xf32, #tpu.memory_space<vmem>>, vector<1x128xf32>
    %50 = vector.broadcast %49 : vector<1x128xf32> to vector<32x128xf32>
    %51 = arith.addf %48, %50 : vector<32x128xf32>
    %cst_46 = arith.constant 0.000000e+00 : f32
    %52 = vector.broadcast %cst_46 : f32 to vector<32x128xf32>
    %53 = arith.maximumf %51, %52 : vector<32x128xf32>
    %c0_47 = arith.constant 0 : index
    %c0_48 = arith.constant 0 : index
    %54 = vector.load %arg21[%c0_47, %c0_48] : memref<128x128xbf16, #tpu.memory_space<vmem>>, vector<128x128xbf16>
    %55 = arith.truncf %53 : vector<32x128xf32> to vector<32x128xbf16>
    %cst_49 = arith.constant dense<0.000000e+00> : vector<32x128xf32>
    %56 = tpu.matmul %55, %54, %cst_49 {dimension_numbers = #tpu.dot_dimension_numbers<[1], [0], [0], [1], [0, 0, 1, 1], [], []>} : vector<32x128xbf16>, vector<128x128xbf16>, vector<32x128xf32> -> vector<32x128xf32>
    %c0_50 = arith.constant 0 : index
    %c0_51 = arith.constant 0 : index
    %57 = vector.load %arg22[%c0_50, %c0_51] : memref<1x128xf32, #tpu.memory_space<vmem>>, vector<1x128xf32>
    %58 = vector.broadcast %57 : vector<1x128xf32> to vector<32x128xf32>
    %59 = arith.addf %56, %58 : vector<32x128xf32>
    %c0_52 = arith.constant 0 : index
    %c0_53 = arith.constant 0 : index
    %60 = vector.load %arg1[%c0_52, %c0_53] : memref<1x256xi32, #tpu.memory_space<vmem>>, vector<1x256xi32>
    %c0_54 = arith.constant 0 : index
    %c0_55 = arith.constant 0 : index
    %61 = vector.load %arg2[%c0_54, %c0_55] : memref<1x256xi32, #tpu.memory_space<vmem>>, vector<1x256xi32>
    %62 = tpu.iota {dimensions = array<i32: 0>} : vector<32x256xi32>
    %63 = vector.broadcast %60 : vector<1x256xi32> to vector<32x256xi32>
    %64 = arith.cmpi eq, %62, %63 : vector<32x256xi32>
    %65 = arith.extui %64 : vector<32x256xi1> to vector<32x256xi32>
    %66 = arith.sitofp %65 : vector<32x256xi32> to vector<32x256xf32>
    %67 = tpu.iota {dimensions = array<i32: 0>} : vector<32x256xi32>
    %68 = vector.broadcast %61 : vector<1x256xi32> to vector<32x256xi32>
    %69 = arith.cmpi eq, %67, %68 : vector<32x256xi32>
    %70 = arith.extui %69 : vector<32x256xi1> to vector<32x256xi32>
    %71 = arith.sitofp %70 : vector<32x256xi32> to vector<32x256xf32>
    %cst_56 = arith.constant dense<0.000000e+00> : vector<256x128xf32>
    %72 = tpu.matmul %66, %45, %cst_56 {dimension_numbers = #tpu.dot_dimension_numbers<[0], [0], [1], [1], [0, 1, 1, 1], [], []>} : vector<32x256xf32>, vector<32x128xf32>, vector<256x128xf32> -> vector<256x128xf32>
    %cst_57 = arith.constant dense<0.000000e+00> : vector<256x128xf32>
    %73 = tpu.matmul %71, %59, %cst_57 {dimension_numbers = #tpu.dot_dimension_numbers<[0], [0], [1], [1], [0, 1, 1, 1], [], []>} : vector<32x256xf32>, vector<32x128xf32>, vector<256x128xf32> -> vector<256x128xf32>
    %74 = arith.mulf %72, %73 : vector<256x128xf32>
    %c0_58 = arith.constant 0 : index
    %c0_59 = arith.constant 0 : index
    %75 = vector.load %arg23[%c0_58, %c0_59] : memref<128x128xbf16, #tpu.memory_space<vmem>>, vector<128x128xbf16>
    %76 = arith.truncf %74 : vector<256x128xf32> to vector<256x128xbf16>
    %cst_60 = arith.constant dense<0.000000e+00> : vector<256x128xf32>
    %77 = tpu.matmul %76, %75, %cst_60 {dimension_numbers = #tpu.dot_dimension_numbers<[1], [0], [0], [1], [0, 0, 1, 1], [], []>} : vector<256x128xbf16>, vector<128x128xbf16>, vector<256x128xf32> -> vector<256x128xf32>
    %c0_61 = arith.constant 0 : index
    %c0_62 = arith.constant 0 : index
    %78 = vector.load %arg24[%c0_61, %c0_62] : memref<1x128xf32, #tpu.memory_space<vmem>>, vector<1x128xf32>
    %79 = vector.broadcast %78 : vector<1x128xf32> to vector<256x128xf32>
    %80 = arith.addf %77, %79 : vector<256x128xf32>
    %cst_63 = arith.constant 0.000000e+00 : f32
    %81 = vector.broadcast %cst_63 : f32 to vector<256x128xf32>
    %82 = arith.maximumf %80, %81 : vector<256x128xf32>
    %c0_64 = arith.constant 0 : index
    %c0_65 = arith.constant 0 : index
    %83 = vector.load %arg25[%c0_64, %c0_65] : memref<128x128xbf16, #tpu.memory_space<vmem>>, vector<128x128xbf16>
    %84 = arith.truncf %82 : vector<256x128xf32> to vector<256x128xbf16>
    %cst_66 = arith.constant dense<0.000000e+00> : vector<256x128xf32>
    %85 = tpu.matmul %84, %83, %cst_66 {dimension_numbers = #tpu.dot_dimension_numbers<[1], [0], [0], [1], [0, 0, 1, 1], [], []>} : vector<256x128xbf16>, vector<128x128xbf16>, vector<256x128xf32> -> vector<256x128xf32>
    %c0_67 = arith.constant 0 : index
    %c0_68 = arith.constant 0 : index
    %86 = vector.load %arg26[%c0_67, %c0_68] : memref<1x128xf32, #tpu.memory_space<vmem>>, vector<1x128xf32>
    %87 = vector.broadcast %86 : vector<1x128xf32> to vector<256x128xf32>
    %88 = arith.addf %85, %87 : vector<256x128xf32>
    %cst_69 = arith.constant 0.000000e+00 : f32
    %89 = vector.broadcast %cst_69 : f32 to vector<256x128xf32>
    %90 = arith.maximumf %88, %89 : vector<256x128xf32>
    %c0_70 = arith.constant 0 : index
    %c0_71 = arith.constant 0 : index
    %91 = vector.load %arg27[%c0_70, %c0_71] : memref<1x128xbf16, #tpu.memory_space<vmem>>, vector<1x128xbf16>
    %92 = arith.truncf %90 : vector<256x128xf32> to vector<256x128xbf16>
    %cst_72 = arith.constant dense<0.000000e+00> : vector<1x256xf32>
    %93 = tpu.matmul %91, %92, %cst_72 {dimension_numbers = #tpu.dot_dimension_numbers<[1], [1], [0], [0], [0, 0, 1, 0], [], []>} : vector<1x128xbf16>, vector<256x128xbf16>, vector<1x256xf32> -> vector<1x256xf32>
    %c0_73 = arith.constant 0 : index
    %c0_74 = arith.constant 0 : index
    %94 = memref.load %arg28[%c0_73, %c0_74] : memref<1x1xf32, #tpu.memory_space<smem>>
    %95 = vector.broadcast %94 : f32 to vector<1x256xf32>
    %96 = arith.addf %93, %95 : vector<1x256xf32>
    %c0_75 = arith.constant 0 : index
    %c0_76 = arith.constant 0 : index
    %c0_77 = arith.constant 0 : index
    %97 = vector.load %arg29[%c0_75, %c0_76, %c0_77] : memref<1x1x256xf32, #tpu.memory_space<vmem>>, vector<1x1x256xf32>
    %98 = vector.shape_cast %97 : vector<1x1x256xf32> to vector<1x256xf32>
    %99 = vector.shape_cast %96 : vector<1x256xf32> to vector<1x1x256xf32>
    tpu.vector_store %arg29[%c0_75, %c0_76, %c0_77], %99 {strides = array<i32>} : memref<1x1x256xf32, #tpu.memory_space<vmem>>, vector<1x1x256xf32>,
    return
  }
  func.func @transform_0(%arg0: i32) -> (i32, i32) {
    %c0_i32 = arith.constant 0 : i32
    %c0_i32_0 = arith.constant 0 : i32
    return %arg0, %c0_i32 : i32, i32
  }
  func.func @transform_1(%arg0: i32) -> (i32, i32) {
    %c0_i32 = arith.constant 0 : i32
    %c0_i32_0 = arith.constant 0 : i32
    return %arg0, %c0_i32 : i32, i32
  }
  func.func @transform_2(%arg0: i32) -> (i32, i32) {
    %c0_i32 = arith.constant 0 : i32
    %c0_i32_0 = arith.constant 0 : i32
    %c0_i32_1 = arith.constant 0 : i32
    return %c0_i32, %c0_i32_0 : i32, i32
  }
  func.func @transform_3(%arg0: i32) -> (i32, i32) {
    %c0_i32 = arith.constant 0 : i32
    %c0_i32_0 = arith.constant 0 : i32
    %c0_i32_1 = arith.constant 0 : i32
    return %c0_i32, %c0_i32_0 : i32, i32
  }
  func.func @transform_4(%arg0: i32) -> (i32, i32) {
    %c0_i32 = arith.constant 0 : i32
    %c0_i32_0 = arith.constant 0 : i32
    %c0_i32_1 = arith.constant 0 : i32
    return %c0_i32, %c0_i32_0 : i32, i32
  }
  func.func @transform_5(%arg0: i32) -> (i32, i32) {
    %c0_i32 = arith.constant 0 : i32
    %c0_i32_0 = arith.constant 0 : i32
    %c0_i32_1 = arith.constant 0 : i32
    return %c0_i32, %c0_i32_0 : i32, i32
  }
  func.func @transform_6(%arg0: i32) -> (i32, i32) {
    %c0_i32 = arith.constant 0 : i32
    %c0_i32_0 = arith.constant 0 : i32
    %c0_i32_1 = arith.constant 0 : i32
    return %c0_i32, %c0_i32_0 : i32, i32
  }
  func.func @transform_7(%arg0: i32) -> (i32, i32) {
    %c0_i32 = arith.constant 0 : i32
    %c0_i32_0 = arith.constant 0 : i32
    %c0_i32_1 = arith.constant 0 : i32
    return %c0_i32, %c0_i32_0 : i32, i32
  }
  func.func @transform_8(%arg0: i32) -> (i32, i32) {
    %c0_i32 = arith.constant 0 : i32
    %c0_i32_0 = arith.constant 0 : i32
    %c0_i32_1 = arith.constant 0 : i32
    return %c0_i32, %c0_i32_0 : i32, i32
  }
  func.func @transform_9(%arg0: i32) -> (i32, i32) {
    %c0_i32 = arith.constant 0 : i32
    %c0_i32_0 = arith.constant 0 : i32
    %c0_i32_1 = arith.constant 0 : i32
    return %c0_i32, %c0_i32_0 : i32, i32
  }
  func.func @transform_10(%arg0: i32) -> (i32, i32) {
    %c0_i32 = arith.constant 0 : i32
    %c0_i32_0 = arith.constant 0 : i32
    %c0_i32_1 = arith.constant 0 : i32
    return %c0_i32, %c0_i32_0 : i32, i32
  }
  func.func @transform_11(%arg0: i32) -> (i32, i32) {
    %c0_i32 = arith.constant 0 : i32
    %c0_i32_0 = arith.constant 0 : i32
    %c0_i32_1 = arith.constant 0 : i32
    return %c0_i32, %c0_i32_0 : i32, i32
  }
  func.func @transform_12(%arg0: i32) -> (i32, i32) {
    %c0_i32 = arith.constant 0 : i32
    %c0_i32_0 = arith.constant 0 : i32
    %c0_i32_1 = arith.constant 0 : i32
    return %c0_i32, %c0_i32_0 : i32, i32
  }
  func.func @transform_13(%arg0: i32) -> (i32, i32) {
    %c0_i32 = arith.constant 0 : i32
    %c0_i32_0 = arith.constant 0 : i32
    %c0_i32_1 = arith.constant 0 : i32
    return %c0_i32, %c0_i32_0 : i32, i32
  }
  func.func @transform_14(%arg0: i32) -> (i32, i32) {
    %c0_i32 = arith.constant 0 : i32
    %c0_i32_0 = arith.constant 0 : i32
    %c0_i32_1 = arith.constant 0 : i32
    return %c0_i32, %c0_i32_0 : i32, i32
  }
  func.func @transform_15(%arg0: i32) -> (i32, i32) {
    %c0_i32 = arith.constant 0 : i32
    %c0_i32_0 = arith.constant 0 : i32
    %c0_i32_1 = arith.constant 0 : i32
    return %c0_i32, %c0_i32_0 : i32, i32
  }
  func.func @transform_16(%arg0: i32) -> (i32, i32) {
    %c0_i32 = arith.constant 0 : i32
    %c0_i32_0 = arith.constant 0 : i32
    %c0_i32_1 = arith.constant 0 : i32
    return %c0_i32, %c0_i32_0 : i32, i32
  }
  func.func @transform_17(%arg0: i32) -> (i32, i32) {
    %c0_i32 = arith.constant 0 : i32
    %c0_i32_0 = arith.constant 0 : i32
    %c0_i32_1 = arith.constant 0 : i32
    return %c0_i32, %c0_i32_0 : i32, i32
  }
  func.func @transform_18(%arg0: i32) -> (i32, i32) {
    %c0_i32 = arith.constant 0 : i32
    %c0_i32_0 = arith.constant 0 : i32
    %c0_i32_1 = arith.constant 0 : i32
    return %c0_i32, %c0_i32_0 : i32, i32
  }
  func.func @transform_19(%arg0: i32) -> (i32, i32) {
    %c0_i32 = arith.constant 0 : i32
    %c0_i32_0 = arith.constant 0 : i32
    %c0_i32_1 = arith.constant 0 : i32
    return %c0_i32, %c0_i32_0 : i32, i32
  }
  func.func @transform_20(%arg0: i32) -> (i32, i32) {
    %c0_i32 = arith.constant 0 : i32
    %c0_i32_0 = arith.constant 0 : i32
    %c0_i32_1 = arith.constant 0 : i32
    return %c0_i32, %c0_i32_0 : i32, i32
  }
  func.func @transform_21(%arg0: i32) -> (i32, i32) {
    %c0_i32 = arith.constant 0 : i32
    %c0_i32_0 = arith.constant 0 : i32
    %c0_i32_1 = arith.constant 0 : i32
    return %c0_i32, %c0_i32_0 : i32, i32
  }
  func.func @transform_22(%arg0: i32) -> (i32, i32) {
    %c0_i32 = arith.constant 0 : i32
    %c0_i32_0 = arith.constant 0 : i32
    %c0_i32_1 = arith.constant 0 : i32
    return %c0_i32, %c0_i32_0 : i32, i32
  }
  func.func @transform_23(%arg0: i32) -> (i32, i32) {
    %c0_i32 = arith.constant 0 : i32
    %c0_i32_0 = arith.constant 0 : i32
    %c0_i32_1 = arith.constant 0 : i32
    return %c0_i32, %c0_i32_0 : i32, i32
  }
  func.func @transform_24(%arg0: i32) -> (i32, i32) {
    %c0_i32 = arith.constant 0 : i32
    %c0_i32_0 = arith.constant 0 : i32
    %c0_i32_1 = arith.constant 0 : i32
    return %c0_i32, %c0_i32_0 : i32, i32
  }
  func.func @transform_25(%arg0: i32) -> (i32, i32) {
    %c0_i32 = arith.constant 0 : i32
    %c0_i32_0 = arith.constant 0 : i32
    %c0_i32_1 = arith.constant 0 : i32
    return %c0_i32, %c0_i32_0 : i32, i32
  }
  func.func @transform_26(%arg0: i32) -> (i32, i32) {
    %c0_i32 = arith.constant 0 : i32
    %c0_i32_0 = arith.constant 0 : i32
    %c0_i32_1 = arith.constant 0 : i32
    return %c0_i32, %c0_i32_0 : i32, i32
  }
  func.func @transform_27(%arg0: i32) -> (i32, i32) {
    %c0_i32 = arith.constant 0 : i32
    %c0_i32_0 = arith.constant 0 : i32
    %c0_i32_1 = arith.constant 0 : i32
    return %c0_i32, %c0_i32_0 : i32, i32
  }
  func.func @transform_28(%arg0: i32) -> (i32, i32, i32) {
    %c0_i32 = arith.constant 0 : i32
    %c0_i32_0 = arith.constant 0 : i32
    %c0_i32_1 = arith.constant 0 : i32
    return %arg0, %c0_i32, %c0_i32_0 : i32, i32, i32
  }
}

</mosaic_0001>

<bundles_post_ra>
// kernel: graphrec_forward.1
= control target key start
LH: loop header
LB: loop body
LE: loop exit
PB: predicated region body
PF: predicated region fallthrough
CT: control target
= control target key end

     0   :  { %s5481_s0 = inlined_call_operand.vmem [shape: s32[1,256], index: 0, kind: input, shape index: {}]   ;;  %s5482_s1 = inlined_call_operand.hbm [shape: s32[1,256], index: 1, kind: input, shape index: {}]   ;;  %s5483_s2 = inlined_call_operand.hbm [shape: f32[32,128], index: 2, kind: input, shape index: {}]   ;;  %s5484_s3 = inlined_call_operand.hbm [shape: f32[32,128], index: 3, kind: input, shape index: {}]   ;;  %s5485_s4 = inlined_call_operand.hbm [shape: f32[32,32], index: 4, kind: input, shape index: {}]   ;;  %s5486_s5 = inlined_call_operand.hbm [shape: f32[32,32], index: 5, kind: input, shape index: {}]   ;;  %s5487_s6 = inlined_call_operand.hbm [shape: f32[32,32], index: 6, kind: input, shape index: {}]   ;;  %s5488_s7 = inlined_call_operand.hbm [shape: bf16[128,128], index: 7, kind: input, shape index: {}]   ;;  %s5489_s8 = inlined_call_operand.vmem [shape: f32[1,128], index: 8, kind: input, shape index: {}]   ;;  %s5490_s9 = inlined_call_operand.hbm [shape: bf16[128,128], index: 9, kind: input, shape index: {}]   ;;  %s5491_s10 = inlined_call_operand.hbm [shape: bf16[128,128], index: 10, kind: input, shape index: {}]   ;;  %s5492_s11 = inlined_call_operand.hbm [shape: bf16[128,128], index: 11, kind: input, shape index: {}]   ;;  %s5493_s12 = inlined_call_operand.hbm [shape: bf16[128,128], index: 12, kind: input, shape index: {}]   ;;  %s5494_s13 = inlined_call_operand.vmem [shape: f32[1,128], index: 13, kind: input, shape index: {}]   ;;  %s5495_s14 = inlined_call_operand.hbm [shape: bf16[128,128], index: 14, kind: input, shape index: {}]   ;;  %s5496_s15 = inlined_call_operand.vmem [shape: f32[1,128], index: 15, kind: input, shape index: {}]   ;;  %s5497_s16 = inlined_call_operand.hbm [shape: bf16[128,128], index: 16, kind: input, shape index: {}]   ;;  %s5498_s17 = inlined_call_operand.vmem [shape: f32[1,128], index: 17, kind: input, shape index: {}]   ;;  %s5499_s18 = inlined_call_operand.hbm [shape: bf16[128,128], index: 18, kind: input, shape index: {}]   ;;  %s5500_s19 = inlined_call_operand.vmem [shape: f32[1,128], index: 19, kind: input, shape index: {}]   ;;  %s5501_s20 = inlined_call_operand.hbm [shape: bf16[128,128], index: 20, kind: input, shape index: {}]   ;;  %s5502_s21 = inlined_call_operand.vmem [shape: f32[1,128], index: 21, kind: input, shape index: {}]   ;;  %s5503_s22 = inlined_call_operand.hbm [shape: bf16[128,128], index: 22, kind: input, shape index: {}]   ;;  %s5504_s23 = inlined_call_operand.vmem [shape: f32[1,128], index: 23, kind: input, shape index: {}]   ;;  %s5505_s24 = inlined_call_operand.hbm [shape: bf16[128,128], index: 24, kind: input, shape index: {}]   ;;  %s5506_s25 = inlined_call_operand.vmem [shape: f32[1,128], index: 25, kind: input, shape index: {}]   ;;  %s5507_s26 = inlined_call_operand.vmem [shape: bf16[1,128], index: 26, kind: input, shape index: {}]   ;;  %s5508_s27 = inlined_call_operand.<no memory space> [shape: f32[1,1], index: 27, kind: input, shape index: {}]   ;;  %s5509_s28 = inlined_call_operand.hbm [shape: f32[1,1,256], index: 28, kind: output, shape index: {}]  }
   0x1   :  { %5510 = sst [smem:[#allocation41_spill]] %s5481_s0 }
   0x2   :  { %5511 = sst [smem:[#allocation42_spill]] %s5482_s1 }
   0x3   :  { %5512 = sst [smem:[#allocation43_spill]] %s5483_s2 }
   0x4   :  { %5513 = sst [smem:[#allocation44_spill]] %s5484_s3 }
   0x5   :  { %5514 = sst [smem:[#allocation45_spill]] %s5485_s4 }
   0x6   :  { %5515 = sst [smem:[#allocation46_spill]] %s5486_s5 }
   0x7   :  { %5516 = sst [smem:[#allocation47_spill]] %s5487_s6 }
   0x8   :  { %5517 = sst [smem:[#allocation48_spill]] %s5488_s7 }
   0x9   :  { %5518 = sst [smem:[#allocation49_spill]] %s5489_s8 }
   0xa   :  { %5519 = sst [smem:[#allocation50_spill]] %s5490_s9 }
   0xb   :  { %5520 = sst [smem:[#allocation51_spill]] %s5491_s10 }
   0xc   :  { %5521 = sst [smem:[#allocation52_spill]] %s5492_s11 }
   0xd   :  { %5522 = sst [smem:[#allocation53_spill]] %s5493_s12 }
   0xe   :  { %34 = vsyncpa [#allocation4], 0 }
   0xf   :  { %35 = vsyncpa [#allocation7], 0 }
  0x10   :  { %36 = vsyncpa [#allocation10], 0 }
  0x11   :  { %37 = vsyncpa [#allocation13], 0 }
  0x12   :  { %38 = vsyncpa [#allocation16], 0 }
  0x13   :  { %39 = vsyncpa [#allocation19], 0 }
  0x14   :  { %40 = vsyncpa [#allocation22], 0 }
  0x15   :  { %41 = vsyncpa [#allocation25], 0 }
  0x16   :  { %42 = vsyncpa [#allocation28], 0 }
  0x17   :  { %43 = vsyncpa [#allocation5], 0  ;;  %s4806_s8 = smov [#allocation6]  }
  0x18   :  { %s61_s5 = sshll.u32 %s4806_s8, 4  ;;  %s62_s5 = int_to_ptr.vmem [resolvable:$true] %s61_s5 }
  0x19   :  { %s4434_s9 = scalar_lea.vmem %s62_s5, 512  ;;  %p4439_p1 = scmp.lt.s32.totalorder %s62_s5, %s62_s5 }
  0x1a   :  { %p4435_p0 = scmp.ne.s32.totalorder %s62_s5, %s4434_s9  ;;  %p4440_p2 = scmp.lt.s32.totalorder %s4434_s9, %s4434_s9 }
  0x1c   :  { %p4441_p3 = por %p4440_p2, %p4439_p1 }
  0x1e   :  { %p4442_p4 = pnand %p4441_p3, %p4435_p0 }
  0x20   :  { %4445 = shalt.err (!%p4442_p4)
}
  0x21   :  { %s4807_s30 = smov 128   ;;  %s4808_s3 = smov 8  }
  0x22   :  { %s5523_s0 = sld [smem:[#allocation43_spill]]  ;;  %s4809_s11 = smov [#allocation9]  }
  0x23   :  { %s85_s29 = sshll.u32 %s4809_s11, 4  ;;  %s4810_s2 = smov [#allocation12]   ;;  %s86_s29 = int_to_ptr.vmem [resolvable:$true] %s85_s29 }
  0x24   :  { %s109_s7 = sshll.u32 %s4810_s2, 4  ;;  %s4454_s12 = scalar_lea.vmem %s86_s29, 512  ;;  %s110_s7 = int_to_ptr.vmem [resolvable:$true] %s109_s7 }
  0x25   :  { %p4455_p5 = scmp.ne.s32.totalorder %s86_s29, %s4454_s12  ;;  %p4459_p6 = scmp.lt.s32.totalorder %s86_s29, %s86_s29 }
  0x26   :  { %p4460_p7 = scmp.lt.s32.totalorder %s4454_s12, %s4454_s12 }
  0x28   :  { %67 = dma.hbm_to_vmem [thread:$0]  %s5523_s0, 512, %s62_s5, [#allocation7], %s4807_s30, %s4807_s30, %s4808_s3  }
  0x29   :  { %p4461_p8 = por %p4460_p7, %p4459_p6 }
  0x2b   :  { %p4462_p9 = pnand %p4461_p8, %p4455_p5 }
  0x2d   :  { %4465 = shalt.err (!%p4462_p9)
}
  0x2e   :  { %s5524_s8 = sld [smem:[#allocation45_spill]]  ;;  %s4474_s5 = scalar_lea.vmem %s110_s7, 512 }
  0x2f   :  { %p4475_p10 = scmp.ne.s32.totalorder %s110_s7, %s4474_s5  ;;  %p4479_p11 = scmp.lt.s32.totalorder %s110_s7, %s110_s7 }
  0x30   :  { %p4480_p12 = scmp.lt.s32.totalorder %s4474_s5, %s4474_s5 }
  0x32   :  { %p4481_p13 = por %p4480_p12, %p4479_p11 }
  0x34   :  { %91 = dma.hbm_to_vmem [thread:$0]  %s5524_s8, 512, %s86_s29, [#allocation10], %s4807_s30, %s4807_s30, %s4808_s3  }
  0x35   :  { %p4482_p0 = pnand %p4481_p13, %p4475_p10 }
  0x37   :  { %4485 = shalt.err (!%p4482_p0)
}
  0x38   :  { %s5525_s10 = sld [smem:[#allocation47_spill]]  ;;  %s4811_s0 = smov [#allocation15]  }
  0x39   :  { %s135_s11 = sshll.u32 %s4811_s0, 4  ;;  %s4812_s2 = smov [#allocation18]   ;;  %s136_s11 = int_to_ptr.vmem [resolvable:$true] %s135_s11 }
  0x3a   :  { %s159_s29 = sshll.u32 %s4812_s2, 4  ;;  %s4494_s12 = scalar_lea.vmem %s136_s11, 1024  ;;  %s160_s29 = int_to_ptr.vmem [resolvable:$true] %s159_s29 }
  0x3b   :  { %p4495_p1 = scmp.ne.s32.totalorder %s136_s11, %s4494_s12  ;;  %p4499_p2 = scmp.lt.s32.totalorder %s136_s11, %s136_s11 }
  0x3c   :  { %p4500_p3 = scmp.lt.s32.totalorder %s4494_s12, %s4494_s12 }
  0x3e   :  { %115 = dma.hbm_to_vmem [thread:$0]  %s5525_s10, 512, %s110_s7, [#allocation13], %s4807_s30, %s4807_s30, %s4808_s3  }
  0x3f   :  { %p4501_p4 = por %p4500_p3, %p4499_p2 }
  0x41   :  { %p4502_p5 = pnand %p4501_p4, %p4495_p1 }
  0x43   :  { %4505 = shalt.err (!%p4502_p5)
}
  0x44   :  { %s4813_s1 = smov 64   ;;  %s4814_s4 = smov 4  }
  0x45   :  { %s5526_s7 = sld [smem:[#allocation50_spill]]  ;;  %s4514_s9 = scalar_lea.vmem %s160_s29, 1024 }
  0x46   :  { %p4515_p6 = scmp.ne.s32.totalorder %s160_s29, %s4514_s9  ;;  %p4519_p7 = scmp.lt.s32.totalorder %s160_s29, %s160_s29 }
  0x47   :  { %p4520_p8 = scmp.lt.s32.totalorder %s4514_s9, %s4514_s9 }
  0x49   :  { %p4521_p9 = por %p4520_p8, %p4519_p7 }
  0x4b   :  { %141 = dma.hbm_to_vmem [thread:$0]  %s5526_s7, 1024, %s136_s11, [#allocation16], %s4813_s1, %s4813_s1, %s4814_s4  }
  0x4c   :  { %p4522_p10 = pnand %p4521_p9, %p4515_p6 }
  0x4e   :  { %4525 = shalt.err (!%p4522_p10)
}
  0x4f   :  { %s5527_s0 = sld [smem:[#allocation52_spill]]  ;;  %s4815_s2 = smov [#allocation21]  }
  0x50   :  { %s185_s12 = sshll.u32 %s4815_s2, 4  ;;  %s4816_s8 = smov [#allocation24]   ;;  %s186_s12 = int_to_ptr.vmem [resolvable:$true] %s185_s12 }
  0x51   :  { %s213_s11 = sshll.u32 %s4816_s8, 4  ;;  %s4534_s5 = scalar_lea.vmem %s186_s12, 1024  ;;  %s214_s11 = int_to_ptr.vmem [resolvable:$true] %s213_s11 }
  0x52   :  { %p4535_p11 = scmp.ne.s32.totalorder %s186_s12, %s4534_s5  ;;  %p4539_p12 = scmp.lt.s32.totalorder %s186_s12, %s186_s12 }
  0x53   :  { %p4540_p13 = scmp.lt.s32.totalorder %s4534_s5, %s4534_s5 }
  0x55   :  { %165 = dma.hbm_to_vmem [thread:$0]  %s5527_s0, 1024, %s160_s29, [#allocation19], %s4813_s1, %s4813_s1, %s4814_s4  }
  0x56   :  { %p4541_p0 = por %p4540_p13, %p4539_p12 }
  0x58   :  { %p4542_p1 = pnand %p4541_p0, %p4535_p11 }
  0x5a   :  { %4545 = shalt.err (!%p4542_p1)
}
  0x5b   :  { %191 = dma.hbm_to_vmem [thread:$0]  %s5495_s14, 1024, %s186_s12, [#allocation22], %s4813_s1, %s4813_s1, %s4814_s4  }
  0x5c   :  { %s4554_s29 = scalar_lea.vmem %s214_s11, 1024  ;;  %p4559_p3 = scmp.lt.s32.totalorder %s214_s11, %s214_s11 }
  0x5d   :  { %p4555_p2 = scmp.ne.s32.totalorder %s214_s11, %s4554_s29  ;;  %p4560_p4 = scmp.lt.s32.totalorder %s4554_s29, %s4554_s29 }
  0x5f   :  { %p4561_p5 = por %p4560_p4, %p4559_p3 }
  0x61   :  { %p4562_p6 = pnand %p4561_p5, %p4555_p2 }
  0x63   :  { %4565 = shalt.err (!%p4562_p6)
}
  0x64   :  { %219 = dma.hbm_to_vmem [thread:$0]  %s5499_s18, 1024, %s214_s11, [#allocation25], %s4813_s1, %s4813_s1, %s4814_s4  }
  0x65   :  { %s4817_s0 = smov [#allocation27]   ;;  %s4818_s8 = smov [#allocation3]  }
  0x66   :  { %s241_s2 = sshll.u32 %s4817_s0, 4  ;;  %s52_s14 = sshll.u32 %s4818_s8, 4  ;;  %s242_s2 = int_to_ptr.vmem [resolvable:$true] %s241_s2  ;;  %s53_s14 = int_to_ptr.vmem [resolvable:$true] %s52_s14 }
  0x67   :  { %s4574_s12 = scalar_lea.vmem %s242_s2, 1024  ;;  %p4579_p8 = scmp.lt.s32.totalorder %s242_s2, %s242_s2 }
  0x68   :  { %p4575_p7 = scmp.ne.s32.totalorder %s242_s2, %s4574_s12  ;;  %p4580_p9 = scmp.lt.s32.totalorder %s4574_s12, %s4574_s12 }
  0x6a   :  { %p4581_p10 = por %p4580_p9, %p4579_p8 }
  0x6c   :  { %p4582_p11 = pnand %p4581_p10, %p4575_p7 }
  0x6e   :  { %4585 = shalt.err (!%p4582_p11)
}
  0x6f   :  { %247 = dma.hbm_to_vmem [thread:$0]  %s5503_s22, 1024, %s242_s2, [#allocation28], %s4813_s1, %s4813_s1, %s4814_s4  }
  0x70   :  { %s4594_s18 = scalar_lea.vmem %s53_s14, 32  ;;  %p4599_p13 = scmp.lt.s32.totalorder %s53_s14, %s53_s14 }
  0x71   :  { %p4595_p12 = scmp.ne.s32.totalorder %s53_s14, %s4594_s18  ;;  %p4600_p0 = scmp.lt.s32.totalorder %s4594_s18, %s4594_s18 }
  0x73   :  { %p4601_p1 = por %p4600_p0, %p4599_p13 }
  0x75   :  { %p4602_p2 = pnand %p4601_p1, %p4595_p12 }
  0x77   :  { %4605 = shalt.err (!%p4602_p2)
}
  0x78   :  { %s5528_s29 = sld [smem:[#allocation42_spill]]  ;;  %s4819_s6 = smov [#allocation8]  }
  0x79   :  { %s73_s10 = sshll.u32 %s4819_s6, 4  ;;  %s4820_s0 = smov [#allocation11]   ;;  %s74_s10 = int_to_ptr.vmem [resolvable:$true] %s73_s10 }
  0x7a   :  { %s97_s8 = sshll.u32 %s4820_s0, 4  ;;  %s4614_s12 = scalar_lea.vmem %s74_s10, 512  ;;  %s98_s8 = int_to_ptr.vmem [resolvable:$true] %s97_s8 }
  0x7b   :  { %p4615_p3 = scmp.ne.s32.totalorder %s74_s10, %s4614_s12  ;;  %p4619_p4 = scmp.lt.s32.totalorder %s74_s10, %s74_s10 }
  0x7c   :  { %p4620_p5 = scmp.lt.s32.totalorder %s4614_s12, %s4614_s12 }
  0x7e   :  { %55 = dma.hbm_to_vmem [thread:$0]  %s5528_s29, 32, %s53_s14, [#allocation4]  }
  0x7f   :  { %p4621_p6 = por %p4620_p5, %p4619_p4 }
  0x81   :  { %p4622_p7 = pnand %p4621_p6, %p4615_p3 }
  0x83   :  { %4625 = shalt.err (!%p4622_p7)
}
  0x84   :  { %s5529_s5 = sld [smem:[#allocation44_spill]]  ;;  %s4634_s14 = scalar_lea.vmem %s98_s8, 512 }
  0x85   :  { %p4635_p8 = scmp.ne.s32.totalorder %s98_s8, %s4634_s14  ;;  %p4639_p9 = scmp.lt.s32.totalorder %s98_s8, %s98_s8 }
  0x86   :  { %p4640_p10 = scmp.lt.s32.totalorder %s4634_s14, %s4634_s14 }
  0x88   :  { %p4641_p11 = por %p4640_p10, %p4639_p9 }
  0x8a   :  { %79 = dma.hbm_to_vmem [thread:$0]  %s5529_s5, 512, %s74_s10, [#allocation7], %s4807_s30, %s4807_s30, %s4808_s3  }
  0x8b   :  { %p4642_p12 = pnand %p4641_p11, %p4635_p8 }
  0x8d   :  { %4645 = shalt.err (!%p4642_p12)
}
  0x8e   :  { %s5530_s11 = sld [smem:[#allocation46_spill]]  ;;  %s4821_s9 = smov [#allocation14]  }
  0x8f   :  { %s121_s29 = sshll.u32 %s4821_s9, 4  ;;  %s4822_s6 = smov [#allocation17]   ;;  %s122_s29 = int_to_ptr.vmem [resolvable:$true] %s121_s29 }
  0x90   :  { %s147_s10 = sshll.u32 %s4822_s6, 4  ;;  %s4654_s0 = scalar_lea.vmem %s122_s29, 1024  ;;  %s148_s10 = int_to_ptr.vmem [resolvable:$true] %s147_s10 }
  0x91   :  { %p4655_p13 = scmp.ne.s32.totalorder %s122_s29, %s4654_s0  ;;  %p4659_p0 = scmp.lt.s32.totalorder %s122_s29, %s122_s29 }
  0x92   :  { %p4660_p1 = scmp.lt.s32.totalorder %s4654_s0, %s4654_s0 }
  0x94   :  { %103 = dma.hbm_to_vmem [thread:$0]  %s5530_s11, 512, %s98_s8, [#allocation10], %s4807_s30, %s4807_s30, %s4808_s3  }
  0x95   :  { %p4661_p2 = por %p4660_p1, %p4659_p0 }
  0x97   :  { %p4662_p3 = pnand %p4661_p2, %p4655_p13 }
  0x99   :  { %4665 = shalt.err (!%p4662_p3)
}
  0x9a   :  { %s5531_s2 = sld [smem:[#allocation48_spill]]  ;;  %s4674_s30 = scalar_lea.vmem %s148_s10, 1024 }
  0x9b   :  { %p4675_p4 = scmp.ne.s32.totalorder %s148_s10, %s4674_s30  ;;  %p4679_p5 = scmp.lt.s32.totalorder %s148_s10, %s148_s10 }
  0x9c   :  { %p4680_p6 = scmp.lt.s32.totalorder %s4674_s30, %s4674_s30 }
  0x9e   :  { %p4681_p7 = por %p4680_p6, %p4679_p5 }
  0xa0   :  { %127 = dma.hbm_to_vmem [thread:$0]  %s5531_s2, 1024, %s122_s29, [#allocation13], %s4813_s1, %s4813_s1, %s4814_s4  }
  0xa1   :  { %p4682_p8 = pnand %p4681_p7, %p4675_p4 }
  0xa3   :  { %4685 = shalt.err (!%p4682_p8)
}
  0xa4   :  { %s5532_s5 = sld [smem:[#allocation51_spill]]  ;;  %s4823_s14 = smov [#allocation20]  }
  0xa5   :  { %s171_s7 = sshll.u32 %s4823_s14, 4  ;;  %s4824_s18 = smov [#allocation23]   ;;  %s172_s7 = int_to_ptr.vmem [resolvable:$true] %s171_s7 }
  0xa6   :  { %s199_s11 = sshll.u32 %s4824_s18, 4  ;;  %s4694_s9 = scalar_lea.vmem %s172_s7, 1024  ;;  %s200_s11 = int_to_ptr.vmem [resolvable:$true] %s199_s11 }
  0xa7   :  { %p4695_p9 = scmp.ne.s32.totalorder %s172_s7, %s4694_s9  ;;  %p4699_p10 = scmp.lt.s32.totalorder %s172_s7, %s172_s7 }
  0xa8   :  { %p4700_p11 = scmp.lt.s32.totalorder %s4694_s9, %s4694_s9 }
  0xaa   :  { %153 = dma.hbm_to_vmem [thread:$0]  %s5532_s5, 1024, %s148_s10, [#allocation16], %s4813_s1, %s4813_s1, %s4814_s4  }
  0xab   :  { %p4701_p12 = por %p4700_p11, %p4699_p10 }
  0xad   :  { %p4702_p13 = pnand %p4701_p12, %p4695_p9 }
  0xaf   :  { %4705 = shalt.err (!%p4702_p13)
}
  0xb0   :  { %s5533_s0 = sld [smem:[#allocation53_spill]]  ;;  %s4714_s10 = scalar_lea.vmem %s200_s11, 1024 }
  0xb1   :  { %p4715_p0 = scmp.ne.s32.totalorder %s200_s11, %s4714_s10  ;;  %p4719_p1 = scmp.lt.s32.totalorder %s200_s11, %s200_s11 }
  0xb2   :  { %p4720_p2 = scmp.lt.s32.totalorder %s4714_s10, %s4714_s10 }
  0xb4   :  { %p4721_p3 = por %p4720_p2, %p4719_p1 }
  0xb6   :  { %177 = dma.hbm_to_vmem [thread:$0]  %s5533_s0, 1024, %s172_s7, [#allocation19], %s4813_s1, %s4813_s1, %s4814_s4  }
  0xb7   :  { %p4722_p4 = pnand %p4721_p3, %p4715_p0 }
  0xb9   :  { %4725 = shalt.err (!%p4722_p4)
}
  0xba   :  { %205 = dma.hbm_to_vmem [thread:$0]  %s5497_s16, 1024, %s200_s11, [#allocation22], %s4813_s1, %s4813_s1, %s4814_s4  }
  0xbb   :  { %s4825_s2 = smov [#allocation26]   ;;  %s4826_s3 = smov [#allocation29]  }
  0xbc   :  { %s227_s30 = sshll.u32 %s4825_s2, 4  ;;  %s255_s8 = sshll.u32 %s4826_s3, 4  ;;  %s228_s30 = int_to_ptr.vmem [resolvable:$true] %s227_s30  ;;  %s256_s8 = int_to_ptr.vmem [resolvable:$true] %s255_s8 }
  0xbd   :  { %s4734_s5 = scalar_lea.vmem %s228_s30, 1024  ;;  %p4739_p6 = scmp.lt.s32.totalorder %s228_s30, %s228_s30 }
  0xbe   :  { %p4735_p5 = scmp.ne.s32.totalorder %s228_s30, %s4734_s5  ;;  %p4740_p7 = scmp.lt.s32.totalorder %s4734_s5, %s4734_s5 }
  0xc0   :  { %p4741_p8 = por %p4740_p7, %p4739_p6 }
  0xc2   :  { %p4742_p9 = pnand %p4741_p8, %p4735_p5 }
  0xc4   :  { %4745 = shalt.err (!%p4742_p9)
}
  0xc5   :  { %233 = dma.hbm_to_vmem [thread:$0]  %s5501_s20, 1024, %s228_s30, [#allocation25], %s4813_s1, %s4813_s1, %s4814_s4  }
  0xc6   :  { %s4754_s16 = scalar_lea.vmem %s256_s8, 1024  ;;  %p4759_p11 = scmp.lt.s32.totalorder %s256_s8, %s256_s8 }
  0xc7   :  { %p4755_p10 = scmp.ne.s32.totalorder %s256_s8, %s4754_s16  ;;  %p4760_p12 = scmp.lt.s32.totalorder %s4754_s16, %s4754_s16 }
  0xc9   :  { %p4761_p13 = por %p4760_p12, %p4759_p11 }
  0xcb   :  { %p4762_p0 = pnand %p4761_p13, %p4755_p10 }
  0xcd   :  { %4765 = shalt.err (!%p4762_p0)
}
  0xce   :  { %261 = dma.hbm_to_vmem [thread:$0]  %s5505_s24, 1024, %s256_s8, [#allocation28], %s4813_s1, %s4813_s1, %s4814_s4  }
  0xcf   :  { %4786 = dma.done.wait [#allocation4], 32  }
  0xd0   :  { %4787 = vsyncadd [#allocation4], 4294967264 }
  0xd1   :  { %4788 = dma.done.wait [#allocation7], 1024  }
  0xd2   :  { %4789 = vsyncadd [#allocation7], 4294966272 }
  0xd3   :  { %4790 = dma.done.wait [#allocation10], 1024  }
  0xd4   :  { %4791 = vsyncadd [#allocation10], 4294966272 }
  0xd5   :  { %4792 = dma.done.wait [#allocation13], 1536  }
  0xd6   :  { %4793 = vsyncadd [#allocation13], 4294965760 }
  0xd7   :  { %4794 = dma.done.wait [#allocation16], 2048  }
  0xd8   :  { %4795 = vsyncadd [#allocation16], 4294965248 }
  0xd9   :  { %4796 = dma.done.wait [#allocation19], 2048  }
  0xda   :  { %4797 = vsyncadd [#allocation19], 4294965248 }
  0xdb   :  { %4798 = dma.done.wait [#allocation22], 2048  }
  0xdc   :  { %4799 = vsyncadd [#allocation22], 4294965248 }
  0xdd   :  { %4800 = dma.done.wait [#allocation25], 2048  }
  0xde   :  { %4801 = vsyncadd [#allocation25], 4294965248 }
  0xdf   :  { %4802 = dma.done.wait [#allocation28], 2048  }
  0xe0   :  { %4803 = vsyncadd [#allocation28], 4294965248  ;;  %vm332_vm0 = vcmask 261120   ;;  %v5074_v0 = vld [vmem:[#allocation6 + $0x18] sm:$0xff]  ;;  %v5076_v1 = vld [vmem:[#allocation6 + $0x10] sm:$0xff]  ;;  %s5534_s1 = sld [smem:[#allocation49_spill]] }
  0xe1   :  { %3708 = vmatprep.subr.mxu0 %v5074_v0  ;;  %v328_v2 = vld [vmem:[#allocation9] sm:$0xff]  ;;  %v5080_v3 = vld [vmem:[#allocation6 + $0x8] sm:$0xff]  ;;  %v5084_v4 = vld [vmem:[#allocation8 + $0x18] sm:$0xff]  ;;  %v649_v39 = vpack.c.bf16 %v5074_v0, %v5076_v1  ;;  %s5535_s6 = sld [smem:[#allocation41_spill]]  ;;  %s4829_s14 = smov [#allocation30]  }
  0xe2   :  { %3709 = vmatpush3.msra.mxu0 %v5074_v0  ;;  %3716 = vmatprep.mubr.msk.f32.mxu0 %vm332_vm0, %v328_v2  ;;  %v5086_v5 = vld [vmem:[#allocation8 + $0x10] sm:$0xff]  ;;  %v5089_v6 = vld [vmem:[#allocation6] sm:$0xff]  ;;  %v329_v8 = vld [vmem:[#allocation9 + $0x8] sm:$0xff]  ;;  %s3251_s7 = sshll.u32 %s4829_s14, 4  ;;  %s3252_s7 = int_to_ptr.vmem [resolvable:$true] %s3251_s7 }
  0xe3   :  { %3710 = vmatprep.subr.mxu0 %v5076_v1  ;;  %v1009_v7 = vpack.c.bf16 %v5084_v4, %v5086_v5  ;;  %v330_v9 = vld [vmem:[#allocation9 + $0x10] sm:$0xff]  ;;  %v4338_v10 = vld [vmem:[#allocation15 + $0x38] sm:$0xff]   ;;  %v5099_v12 = vld [vmem:[#allocation8 + $0x8] sm:$0xff]  ;;  %v648_v37 = vpack.c.bf16 %v5080_v3, %v5089_v6  ;;  %s4766_s16 = scalar_lea.vmem %s3252_s7, 32  ;;  %p4771_p2 = scmp.lt.s32.totalorder %s3252_s7, %s3252_s7 }
  0xe4   :  { %3711 = vmatpush3.msra.mxu0 %v5076_v1  ;;  %v331_v11 = vld [vmem:[#allocation9 + $0x18] sm:$0xff]  ;;  %v430_v13 = vld [vmem:[#allocation11] sm:$0xff]  ;;  %3750 = vmatprep.subr.bf16.mxu1 %v4338_v10  ;;  %v4340_v14 = vld [vmem:[#allocation15 + $0x30] sm:$0xff]   ;;  %p4767_p1 = scmp.ne.s32.totalorder %s3252_s7, %s4766_s16  ;;  %p4772_p3 = scmp.lt.s32.totalorder %s4766_s16, %s4766_s16 }
  0xe5   :  { %3712 = vmatprep.subr.mxu0 %v5080_v3  ;;  %v5105_v15 = vld [vmem:[#allocation8] sm:$0xff]  ;;  %3751 = vmatpush3.bf16.msra.mxu1 %v4338_v10  ;;  %v431_v16 = vld [vmem:[#allocation11 + $0x8] sm:$0xff]  ;;  %v432_v17 = vld [vmem:[#allocation11 + $0x10] sm:$0xff] }
  0xe6   :  { %3713 = vmatpush3.msra.mxu0 %v5080_v3  ;;  %3752 = vmatprep.subr.bf16.mxu1 %v4340_v14  ;;  %v4342_v18 = vld [vmem:[#allocation15 + $0x28] sm:$0xff]   ;;  %v433_v19 = vld [vmem:[#allocation11 + $0x18] sm:$0xff]  ;;  %v531_v20 = vld [vmem:[#allocation12] sm:$0xff]  ;;  %p4773_p4 = por %p4772_p3, %p4771_p2 }
  0xe7   :  { %3714 = vmatprep.subr.mxu0 %v5089_v6  ;;  %v4344_v21 = vld [vmem:[#allocation15 + $0x20] sm:$0xff]   ;;  %v4339_v22 = vld [vmem:[#allocation14 + $0x38] sm:$0xff]   ;;  %v532_v23 = vld [vmem:[#allocation12 + $0x8] sm:$0xff] }
  0xe8   :  { %3715 = vmatpush3.msra.mxu0 %v5089_v6  ;;  %v533_v24 = vld [vmem:[#allocation12 + $0x10] sm:$0xff]  ;;  %v4346_v26 = vld [vmem:[#allocation15 + $0x18] sm:$0xff]   ;;  %v4343_v29 = vld [vmem:[#allocation14 + $0x28] sm:$0xff]   ;;  %p4774_p5 = pnand %p4773_p4, %p4767_p1 }
  0xe9   :  { %3717 = vmatmul.mubr.msk.f32.vlgmr.msra.gmra.mxu0 %vm332_vm0, %v329_v8  ;;  %3722 = vmatprep.subr.mxu0 %v5084_v4  ;;  %v4341_v25 = vld [vmem:[#allocation14 + $0x30] sm:$0xff]   ;;  %v534_v28 = vld [vmem:[#allocation12 + $0x18] sm:$0xff]  ;;  %v4345_v30 = vld [vmem:[#allocation14 + $0x20] sm:$0xff]  }
  0xea   :  { %3719 = vmatprep.mubr.msk.f32.mxu0 %vm332_vm0, %v330_v9  ;;  %3723 = vmatpush3.msra.mxu0 %v5084_v4  ;;  %v4348_v27 = vld [vmem:[#allocation15 + $0x10] sm:$0xff]   ;;  %v4347_v31 = vld [vmem:[#allocation14 + $0x18] sm:$0xff]   ;;  %v4350_v33 = vld [vmem:[#allocation15 + $0x8] sm:$0xff]  }
  0xeb   :  { %3724 = vmatprep.subr.mxu0 %v5086_v5  ;;  %3753 = vmatpush3.bf16.msra.mxu1 %v4340_v14  ;;  %v4349_v32 = vld [vmem:[#allocation14 + $0x10] sm:$0xff]   ;;  %v4351_v34 = vld [vmem:[#allocation14 + $0x8] sm:$0xff]   ;;  %v4352_v35 = vld [vmem:[#allocation15] sm:$0xff]   ;;  %v1008_v14 = vpack.c.bf16 %v5099_v12, %v5105_v15 }
  0xec   :  { %3725 = vmatpush3.msra.mxu0 %v5086_v5  ;;  %3754 = vmatprep.subr.bf16.mxu1 %v4342_v18  ;;  %v4353_v36 = vld [vmem:[#allocation14] sm:$0xff]   ;;  %v4354_v38 = vld [vmem:[#allocation17 + $0x38] sm:$0xff]   ;;  %v4363_v41 = vld [vmem:[#allocation20 + $0x30] sm:$0xff]  }
  0xed   :  { %3720 = vmatmul.mubr.msk.f32.gmra.mxu0 %vm332_vm0, %v331_v11  ;;  %3726 = vmatprep.subr.mxu0 %v5099_v12  ;;  %v4361_v40 = vld [vmem:[#allocation20 + $0x38] sm:$0xff]   ;;  %v4364_v42 = vld [vmem:[#allocation20 + $0x28] sm:$0xff]   ;;  %v4366_v43 = vld [vmem:[#allocation20 + $0x20] sm:$0xff]  }
  0xee   :  { %3727 = vmatpush3.msra.mxu0 %v5099_v12  ;;  %3730 = vmatprep.mubr.msk.f32.mxu0 %vm332_vm0, %v430_v13  ;;  %v4368_v44 = vld [vmem:[#allocation20 + $0x18] sm:$0xff]   ;;  %v4370_v45 = vld [vmem:[#allocation20 + $0x10] sm:$0xff]   ;;  %v4372_v46 = vld [vmem:[#allocation20 + $0x8] sm:$0xff]  }
  0xef   :  { %3728 = vmatprep.subr.mxu0 %v5105_v15  ;;  %3755 = vmatpush3.bf16.msra.mxu1 %v4342_v18  ;;  %v4374_v47 = vld [vmem:[#allocation20] sm:$0xff]   ;;  %v4355_v54 = vld [vmem:[#allocation17 + $0x30] sm:$0xff]   ;;  %v4356_v57 = vld [vmem:[#allocation17 + $0x28] sm:$0xff]  }
  0xf0   :  { %3729 = vmatpush3.msra.mxu0 %v5105_v15  ;;  %3756 = vmatprep.subr.bf16.mxu1 %v4344_v21  ;;  %v4357_v61 = vld [vmem:[#allocation17 + $0x20] sm:$0xff]   ;;  %v4360_v9 = vld [vmem:[#allocation17 + $0x8] sm:$0xff]   ;;  %v4365_v11 = vld [vmem:[#allocation18 + $0x38] sm:$0xff]  }
  0xf1   :  { %3731 = vmatmul.mubr.msk.f32.vlgmr.msra.gmra.mxu0 %vm332_vm0, %v431_v16  ;;  %3736 = vmatprep.subr.mxu0 %v5074_v0  ;;  %v4362_v10 = vld [vmem:[#allocation17] sm:$0xff]   ;;  %v4367_v16 = vld [vmem:[#allocation18 + $0x30] sm:$0xff]   ;;  %v4378_v15 = vld [vmem:[#allocation21 + $0x38] sm:$0xff]  }
  0xf2   :  { %3733 = vmatprep.mubr.msk.f32.mxu0 %vm332_vm0, %v432_v17  ;;  %3737 = vmatpush3.msra.mxu0 %v5074_v0  ;;  %v4358_v0 = vld [vmem:[#allocation17 + $0x18] sm:$0xff]   ;;  %v4369_v17 = vld [vmem:[#allocation18 + $0x28] sm:$0xff]   ;;  %v4371_v18 = vld [vmem:[#allocation18 + $0x20] sm:$0xff]  }
  0xf3   :  { %3738 = vmatprep.subr.mxu0 %v5076_v1  ;;  %3757 = vmatpush3.bf16.msra.mxu1 %v4344_v21  ;;  %v4376_v21 = vld [vmem:[#allocation18 + $0x8] sm:$0xff]   ;;  %v4377_v12 = vld [vmem:[#allocation18] sm:$0xff]  }
  0xf4   :  { %3739 = vmatpush3.msra.mxu0 %v5076_v1  ;;  %3758 = vmatprep.subr.bf16.mxu1 %v4346_v26  ;;  %v4384_v4 = vld [vmem:[#allocation21 + $0x8] sm:$0xff]   ;;  %v4385_v5 = vld [vmem:[#allocation21] sm:$0xff]  }
  0xf5   :  { %3734 = vmatmul.mubr.msk.f32.gmra.mxu0 %vm332_vm0, %v433_v19  ;;  %3740 = vmatprep.subr.mxu0 %v5080_v3  ;;  %v4373_v19 = vld [vmem:[#allocation18 + $0x18] sm:$0xff]  }
  0xf6   :  { %3741 = vmatpush3.msra.mxu0 %v5080_v3  ;;  %3744 = vmatprep.mubr.msk.f32.mxu0 %vm332_vm0, %v531_v20  ;;  %v4375_v20 = vld [vmem:[#allocation18 + $0x10] sm:$0xff]  }
  0xf7   :  { %3742 = vmatprep.subr.mxu0 %v5089_v6  ;;  %3759 = vmatpush3.bf16.msra.mxu1 %v4346_v26  ;;  %v4383_v26 = vld [vmem:[#allocation21 + $0x10] sm:$0xff]  }
  0xf8   :  { %3743 = vmatpush3.msra.mxu0 %v5089_v6  ;;  %3760 = vmatprep.subr.bf16.mxu1 %v4348_v27  ;;  %v4359_v6 = vld [vmem:[#allocation17 + $0x10] sm:$0xff]  }
  0xf9   :  { %3745 = vmatmul.mubr.msk.f32.vlgmr.msra.gmra.mxu0 %vm332_vm0, %v532_v23  ;;  %3770 = vmatprep.subr.bf16.mxu0 %v4339_v22  ;;  %v4380_v23 = vld [vmem:[#allocation21 + $0x28] sm:$0xff]  }
  0xfa   :  { %3747 = vmatprep.mubr.msk.f32.mxu0 %vm332_vm0, %v533_v24  ;;  %3771 = vmatpush3.bf16.msra.mxu0 %v4339_v22  ;;  %v4379_v22 = vld [vmem:[#allocation21 + $0x30] sm:$0xff]   ;;  %v4381_v24 = vld [vmem:[#allocation21 + $0x20] sm:$0xff]  }
  0xfb   :  { %3772 = vmatprep.subr.bf16.mxu0 %v4341_v25  ;;  %3761 = vmatpush3.bf16.msra.mxu1 %v4348_v27  ;;  %v4394_v27 = vld [vmem:[#allocation23 + $0x38] sm:$0xff]  }
  0xfc   :  { %3762 = vmatprep.subr.bf16.mxu1 %v4350_v33 }
  0xfd   :  { %3748 = vmatmul.mubr.msk.f32.gmra.mxu0 %vm332_vm0, %v534_v28  ;;  %v4395_v28 = vld [vmem:[#allocation23 + $0x30] sm:$0xff]  }
  0xfe   :  { %3773 = vmatpush3.bf16.msra.mxu0 %v4341_v25  ;;  %3786 = vmatprep.mubr.bf16.mxu0 %v648_v37  ;;  %v4382_v25 = vld [vmem:[#allocation21 + $0x18] sm:$0xff]  }
  0xff   :  { %3774 = vmatprep.subr.bf16.mxu0 %v4343_v29  ;;  %3763 = vmatpush3.bf16.msra.mxu1 %v4350_v33 }
 0x100   :  { %3764 = vmatprep.subr.bf16.mxu1 %v4352_v35 }
 0x102   :  { %3775 = vmatpush3.bf16.msra.mxu0 %v4343_v29  ;;  %v4396_v29 = vld [vmem:[#allocation23 + $0x28] sm:$0xff]  }
 0x103   :  { %3776 = vmatprep.subr.bf16.mxu0 %v4345_v30  ;;  %3765 = vmatpush3.bf16.msra.mxu1 %v4352_v35 }
 0x104   :  { %3790 = vmatprep.subr.bf16.mxu1 %v4354_v38 }
 0x106   :  { %3777 = vmatpush3.bf16.msra.mxu0 %v4345_v30  ;;  %v4397_v30 = vld [vmem:[#allocation23 + $0x20] sm:$0xff]  }
 0x107   :  { %3778 = vmatprep.subr.bf16.mxu0 %v4347_v31 }
 0x10a   :  { %3779 = vmatpush3.bf16.msra.mxu0 %v4347_v31  ;;  %v4398_v31 = vld [vmem:[#allocation23 + $0x18] sm:$0xff]  }
 0x10b   :  { %3780 = vmatprep.subr.bf16.mxu0 %v4349_v32 }
 0x10e   :  { %3781 = vmatpush3.bf16.msra.mxu0 %v4349_v32 }
 0x10f   :  { %3782 = vmatprep.subr.bf16.mxu0 %v4351_v34 }
 0x112   :  { %3783 = vmatpush3.bf16.msra.mxu0 %v4351_v34 }
 0x113   :  { %3784 = vmatprep.subr.bf16.mxu0 %v4353_v36 }
 0x116   :  { %3785 = vmatpush3.bf16.msra.mxu0 %v4353_v36 }
 0x117   :  { %3810 = vmatprep.subr.bf16.mxu0 %v4361_v40 }
 0x119   :  { %3787 = vmatmul.mubr.bf16.vlgmr.msra.gmra.mxu0 %v649_v39 }
 0x11a   :  { %3811 = vmatpush3.bf16.msra.mxu0 %v4361_v40 }
 0x11b   :  { %3812 = vmatprep.subr.bf16.mxu0 %v4363_v41 }
 0x11e   :  { %3813 = vmatpush3.bf16.msra.mxu0 %v4363_v41 }
 0x11f   :  { %3814 = vmatprep.subr.bf16.mxu0 %v4364_v42 }
 0x122   :  { %3815 = vmatpush3.bf16.msra.mxu0 %v4364_v42 }
 0x123   :  { %3816 = vmatprep.subr.bf16.mxu0 %v4366_v43 }
 0x126   :  { %3817 = vmatpush3.bf16.msra.mxu0 %v4366_v43 }
 0x127   :  { %3818 = vmatprep.subr.bf16.mxu0 %v4368_v44 }
 0x12a   :  { %3819 = vmatpush3.bf16.msra.mxu0 %v4368_v44 }
 0x12b   :  { %3820 = vmatprep.subr.bf16.mxu0 %v4370_v45 }
 0x12e   :  { %3821 = vmatpush3.bf16.msra.mxu0 %v4370_v45 }
 0x12f   :  { %3822 = vmatprep.subr.bf16.mxu0 %v4372_v46 }
 0x132   :  { %3823 = vmatpush3.bf16.msra.mxu0 %v4372_v46 }
 0x133   :  { %3824 = vmatprep.subr.bf16.mxu0 %v4374_v47 }
 0x136   :  { %3825 = vmatpush3.bf16.msra.mxu0 %v4374_v47 }
 0x137   :  { %3850 = vmatprep.subr.bf16.mxu0 %v4378_v15 }
 0x1a9   :  { %v3718_v48 = vpop.f32.mrf.mxu0 }
 0x1ab   :  { %v411_v49 = vpop.f32.mrf.mxu0 }
 0x1ac   :  { %v666_v50 = vpack.c.bf16 %v3718_v48, %v411_v49 }
 0x1ad   :  { %v3721_v51 = vpop.f32.mrf.mxu0 }
 0x1ae   :  { %3766 = vmatprep.mubr.bf16.mxu1 %v666_v50 }
 0x1af   :  { %v421_v52 = vpop.f32.mrf.mxu0 }
 0x1b0   :  { %v667_v53 = vpack.c.bf16 %v3721_v51, %v421_v52  ;;  %v3304_v51 = vld [vmem:[%s5534_s1] ss:$0 sm:$0xff] }
 0x1b1   :  { %v3732_v55 = vpop.f32.mrf.mxu0 }
 0x1b2   :  { %3767 = vmatmul.mubr.bf16.vlgmr.msra.gmra.mxu1 %v667_v53 }
 0x1b3   :  { %3791 = vmatpush3.bf16.msra.mxu1 %v4354_v38  ;;  %v512_v56 = vpop.f32.mrf.mxu0 }
 0x1b4   :  { %3792 = vmatprep.subr.bf16.mxu1 %v4355_v54  ;;  %v878_v58 = vpack.c.bf16 %v3732_v55, %v512_v56 }
 0x1b5   :  { %v3735_v59 = vpop.f32.mrf.mxu0 }
 0x1b6   :  { %3806 = vmatprep.mubr.bf16.mxu1 %v878_v58 }
 0x1b7   :  { %3793 = vmatpush3.bf16.msra.mxu1 %v4355_v54  ;;  %v522_v60 = vpop.f32.mrf.mxu0 }
 0x1b8   :  { %3794 = vmatprep.subr.bf16.mxu1 %v4356_v57  ;;  %v879_v13 = vpack.c.bf16 %v3735_v59, %v522_v60  ;;  %v4387_v59 = vld [vmem:[#allocation24 + $0x30] sm:$0xff]   ;;  %v4388_v60 = vld [vmem:[#allocation24 + $0x28] sm:$0xff]  }
 0x1b9   :  { %v3746_v62 = vpop.f32.mrf.mxu0 }
 0x1bb   :  { %3795 = vmatpush3.bf16.msra.mxu1 %v4356_v57  ;;  %v613_v63 = vpop.f32.mrf.mxu0 }
 0x1bc   :  { %3796 = vmatprep.subr.bf16.mxu1 %v4357_v61  ;;  %v1026_v1 = vpack.c.bf16 %v3746_v62, %v613_v63  ;;  %v4390_v62 = vld [vmem:[#allocation24 + $0x18] sm:$0xff]  }
 0x1bd   :  { %v3749_v2 = vpop.f32.mrf.mxu0 }
 0x1be   :  { %3826 = vmatprep.mubr.bf16.mxu0 %v1026_v1 }
 0x1bf   :  { %3797 = vmatpush3.bf16.msra.mxu1 %v4357_v61  ;;  %v623_v3 = vpop.f32.mrf.mxu0  ;;  %v4389_v61 = vld [vmem:[#allocation24 + $0x20] sm:$0xff]  }
 0x1c0   :  { %3798 = vmatprep.subr.bf16.mxu1 %v4358_v0  ;;  %v1027_v8 = vpack.c.bf16 %v3749_v2, %v623_v3  ;;  %v4392_v3 = vld [vmem:[#allocation24 + $0x8] sm:$0xff]  }
 0x1c2   :  { %3827 = vmatmul.mubr.bf16.vlgmr.msra.gmra.mxu0 %v1027_v8 }
 0x1c3   :  { %3799 = vmatpush3.bf16.msra.mxu1 %v4358_v0  ;;  %3851 = vmatpush3.bf16.msra.mxu0 %v4378_v15  ;;  %v4391_v0 = vld [vmem:[#allocation24 + $0x10] sm:$0xff]  }
 0x1c4   :  { %3800 = vmatprep.subr.bf16.mxu1 %v4359_v6  ;;  %3852 = vmatprep.subr.bf16.mxu0 %v4379_v22 }
 0x1c7   :  { %3801 = vmatpush3.bf16.msra.mxu1 %v4359_v6  ;;  %3853 = vmatpush3.bf16.msra.mxu0 %v4379_v22 }
 0x1c8   :  { %3802 = vmatprep.subr.bf16.mxu1 %v4360_v9  ;;  %3854 = vmatprep.subr.bf16.mxu0 %v4380_v23 }
 0x1cb   :  { %3803 = vmatpush3.bf16.msra.mxu1 %v4360_v9  ;;  %3855 = vmatpush3.bf16.msra.mxu0 %v4380_v23 }
 0x1cc   :  { %3804 = vmatprep.subr.bf16.mxu1 %v4362_v10  ;;  %3856 = vmatprep.subr.bf16.mxu0 %v4381_v24 }
 0x1cf   :  { %3805 = vmatpush3.bf16.msra.mxu1 %v4362_v10  ;;  %3857 = vmatpush3.bf16.msra.mxu0 %v4381_v24  ;;  %v4393_v10 = vld [vmem:[#allocation24] sm:$0xff]   ;;  %v4399_v24 = vld [vmem:[#allocation23 + $0x10] sm:$0xff]  }
 0x1d0   :  { %3830 = vmatprep.subr.bf16.mxu1 %v4365_v11  ;;  %3858 = vmatprep.subr.bf16.mxu0 %v4382_v25 }
 0x1d2   :  { %3807 = vmatmul.mubr.bf16.vlgmr.msra.gmra.mxu1 %v879_v13 }
 0x1d3   :  { %3831 = vmatpush3.bf16.msra.mxu1 %v4365_v11  ;;  %3846 = vmatprep.mubr.bf16.mxu1 %v1008_v14 }
 0x1d4   :  { %3832 = vmatprep.subr.bf16.mxu1 %v4367_v16  ;;  %3859 = vmatpush3.bf16.msra.mxu0 %v4382_v25  ;;  %v4400_v25 = vld [vmem:[#allocation23 + $0x8] sm:$0xff]  }
 0x1d5   :  { %3860 = vmatprep.subr.bf16.mxu0 %v4383_v26 }
 0x1d7   :  { %3833 = vmatpush3.bf16.msra.mxu1 %v4367_v16 }
 0x1d8   :  { %3834 = vmatprep.subr.bf16.mxu1 %v4369_v17  ;;  %3861 = vmatpush3.bf16.msra.mxu0 %v4383_v26  ;;  %v4401_v26 = vld [vmem:[#allocation23] sm:$0xff]  }
 0x1d9   :  { %3862 = vmatprep.subr.bf16.mxu0 %v4384_v4  ;;  %v3788_v33 = vpop.f32.mrf.mxu0 }
 0x1db   :  { %3835 = vmatpush3.bf16.msra.mxu1 %v4369_v17  ;;  %v847_v35 = vpop.f32.mrf.mxu0 }
 0x1dc   :  { %3836 = vmatprep.subr.bf16.mxu1 %v4371_v18  ;;  %3863 = vmatpush3.bf16.msra.mxu0 %v4384_v4  ;;  %v5143_v4 = vld [vmem:[#allocation26 + $0x38] sm:$0xff]  }
 0x1dd   :  { %3864 = vmatprep.subr.bf16.mxu0 %v4385_v5  ;;  %v3789_v37 = vpop.f32.mrf.mxu0 }
 0x1df   :  { %3837 = vmatpush3.bf16.msra.mxu1 %v4371_v18  ;;  %v850_v40 = vpop.f32.mrf.mxu0  ;;  %v3321_v18 = vld [vmem:[%s5494_s13] ss:$0 sm:$0xff] }
 0x1e0   :  { %3838 = vmatprep.subr.bf16.mxu1 %v4373_v19  ;;  %3865 = vmatpush3.bf16.msra.mxu0 %v4385_v5  ;;  %v1731_v5 = vlaneseq }
 0x1e3   :  { %3839 = vmatpush3.bf16.msra.mxu1 %v4373_v19 }
 0x1e4   :  { %3840 = vmatprep.subr.bf16.mxu1 %v4375_v20 }
 0x1e7   :  { %3841 = vmatpush3.bf16.msra.mxu1 %v4375_v20 }
 0x1e8   :  { %3842 = vmatprep.subr.bf16.mxu1 %v4376_v21 }
 0x1eb   :  { %3843 = vmatpush3.bf16.msra.mxu1 %v4376_v21 }
 0x1ec   :  { %3844 = vmatprep.subr.bf16.mxu1 %v4377_v12 }
 0x1ef   :  { %3845 = vmatpush3.bf16.msra.mxu1 %v4377_v12 }
 0x1f0   :  { %3870 = vmatprep.subr.bf16.mxu1 %v4394_v27 }
 0x1f2   :  { %3847 = vmatmul.mubr.bf16.vlgmr.msra.gmra.mxu1 %v1009_v7  ;;  %v4386_v7 = vld [vmem:[#allocation24 + $0x38] sm:$0xff]  }
 0x1f3   :  { %3890 = vmatprep.subr.bf16.mxu0 %v4386_v7  ;;  %3871 = vmatpush3.bf16.msra.mxu1 %v4394_v27  ;;  %v1729_v27 = vld [vmem:[%s5535_s6] sm:$0x3] }
 0x1f4   :  { %3872 = vmatprep.subr.bf16.mxu1 %v4395_v28 }
 0x1f7   :  { %3873 = vmatpush3.bf16.msra.mxu1 %v4395_v28  ;;  %v1730_v28 = vld [vmem:[#allocation3] sm:$0x3] }
 0x1f8   :  { %3874 = vmatprep.subr.bf16.mxu1 %v4396_v29 }
 0x1fb   :  { %3875 = vmatpush3.bf16.msra.mxu1 %v4396_v29 }
 0x1fc   :  { %3876 = vmatprep.subr.bf16.mxu1 %v4397_v30 }
 0x1ff   :  { %3877 = vmatpush3.bf16.msra.mxu1 %v4397_v30 }
 0x200   :  { %3878 = vmatprep.subr.bf16.mxu1 %v4398_v31 }
 0x203   :  { %3879 = vmatpush3.bf16.msra.mxu1 %v4398_v31 }
 0x204   :  { %3880 = vmatprep.subr.bf16.mxu1 %v4399_v24 }
 0x207   :  { %3881 = vmatpush3.bf16.msra.mxu1 %v4399_v24 }
 0x208   :  { %3882 = vmatprep.subr.bf16.mxu1 %v4400_v25 }
 0x20b   :  { %3883 = vmatpush3.bf16.msra.mxu1 %v4400_v25  ;;  %v3340_v25 = vld [vmem:[%s5500_s19] ss:$0 sm:$0xff] }
 0x20c   :  { %3884 = vmatprep.subr.bf16.mxu1 %v4401_v26 }
 0x20f   :  { %3885 = vmatpush3.bf16.msra.mxu1 %v4401_v26 }
 0x210   :  { %3910 = vmatprep.subr.bf16.mxu1 %v5143_v4 }
 0x272   :  { %v3768_v32 = vpop.f32.mrf.mxu1 }
 0x273   :  { %v856_v44 = vadd.f32 %v3788_v33, %v3768_v32 }
 0x274   :  { %v750_v34 = vpop.f32.mrf.mxu1 }
 0x275   :  { %v848_v42 = vadd.f32 %v847_v35, %v750_v34 }
 0x276   :  { %v3769_v36 = vpop.f32.mrf.mxu1 }
 0x277   :  { %v859_v43 = vadd.f32 %v3789_v37, %v3769_v36 }
 0x278   :  { %v753_v38 = vpop.f32.mrf.mxu1 }
 0x279   :  { %v851_v46 = vadd.f32 %v850_v40, %v753_v38  ;;  %v4827_v38 = vmov 0.0  }
 0x282   :  { %v3828_v63 = vpop.f32.mrf.mxu0 }
 0x284   :  { %v1110_v1 = vpop.f32.mrf.mxu0 }
 0x286   :  { %v3829_v6 = vpop.f32.mrf.mxu0 }
 0x288   :  { %v1113_v14 = vpop.f32.mrf.mxu0 }
 0x292   :  { %v3808_v39 = vpop.f32.mrf.mxu1 }
 0x293   :  { %v979_v49 = vadd.f32 %v3808_v39, %v856_v44 }
 0x294   :  { %v962_v41 = vpop.f32.mrf.mxu1 }
 0x295   :  { %v977_v47 = vadd.f32 %v962_v41, %v848_v42  ;;  %v990_v56 = vadd.f32 %v3304_v51, %v979_v49 }
 0x296   :  { %v3809_v45 = vpop.f32.mrf.mxu1 }
 0x297   :  { %v980_v48 = vadd.f32 %v3809_v45, %v859_v43  ;;  %v988_v54 = vadd.f32 %v3304_v51, %v977_v47 }
 0x298   :  { %v965_v50 = vpop.f32.mrf.mxu1 }
 0x299   :  { %v978_v52 = vadd.f32 %v965_v50, %v851_v46  ;;  %v991_v53 = vadd.f32 %v3304_v51, %v980_v48 }
 0x29b   :  { %v989_v55 = vadd.f32 %v3304_v51, %v978_v52  ;;  %v1250_v58 = vpack.c.bf16 %v991_v53, %v990_v56 }
 0x29d   :  { %v1249_v57 = vpack.c.bf16 %v989_v55, %v988_v54 }
 0x29f   :  { %3866 = vmatprep.mubr.bf16.mxu0 %v1249_v57 }
 0x2a0   :  { %3867 = vmatmul.mubr.bf16.vlgmr.msra.gmra.mxu0 %v1250_v58 }
 0x2a1   :  { %3891 = vmatpush3.bf16.msra.mxu0 %v4386_v7  ;;  %v5147_v7 = vshrl.u32 %v1731_v5, 7 }
 0x2a2   :  { %3892 = vmatprep.subr.bf16.mxu0 %v4387_v59 }
 0x2a3   :  { %v1738_v29 = vsub.s32 0, %v5147_v7  ;;  %v1733_v30 = vadd.s32 8, %v5147_v7  ;;  %v1742_v31 = vsub.s32 1, %v5147_v7  ;;  %v1734_v34 = vadd.s32 16, %v5147_v7 }
 0x2a4   :  { %v1735_v35 = vadd.s32 24, %v5147_v7 }
 0x2a5   :  { %3893 = vmatpush3.bf16.msra.mxu0 %v4387_v59  ;;  %v1739_v32 = vrot.slane %v1729_v27, %v1738_v29  ;;  %v1771_v33 = vrot.slane %v1730_v28, %v1738_v29  ;;  %v1743_v36 = vrot.slane %v1729_v27, %v1742_v31  ;;  %v1775_v37 = vrot.slane %v1730_v28, %v1742_v31 }
 0x2a6   :  { %3894 = vmatprep.subr.bf16.mxu0 %v4388_v60 }
 0x2a7   :  { %vm1744_vm1 = vcmp.eq.s32.totalorder %v5147_v7, %v1739_v32  ;;  %vm1776_vm2 = vcmp.eq.s32.totalorder %v5147_v7, %v1771_v33  ;;  %vm1746_vm3 = vcmp.eq.s32.totalorder %v1733_v30, %v1739_v32  ;;  %vm1778_vm4 = vcmp.eq.s32.totalorder %v1733_v30, %v1771_v33 }
 0x2a8   :  { %v3358_v39 = vsel %vm1744_vm1, 1.0, %v4827_v38  ;;  %v3366_v40 = vsel %vm1776_vm2, 1.0, %v4827_v38  ;;  %v3360_v41 = vsel %vm1746_vm3, 1.0, %v4827_v38  ;;  %v3368_v42 = vsel %vm1778_vm4, 1.0, %v4827_v38 }
 0x2a9   :  { %3895 = vmatpush3.bf16.msra.mxu0 %v4388_v60  ;;  %v4162_v43 = vpack.i.bf16 %v3366_v40, %v3358_v39  ;;  %vm1748_vm5 = vcmp.eq.s32.totalorder %v1734_v34, %v1739_v32  ;;  %vm1780_vm6 = vcmp.eq.s32.totalorder %v1734_v34, %v1771_v33  ;;  %v4164_v44 = vpack.i.bf16 %v3368_v42, %v3360_v41 }
 0x2aa   :  { %3896 = vmatprep.subr.bf16.mxu0 %v4389_v61  ;;  %v3362_v45 = vsel %vm1748_vm5, 1.0, %v4827_v38  ;;  %v3370_v46 = vsel %vm1780_vm6, 1.0, %v4827_v38  ;;  %vm1745_vm7 = vcmp.eq.s32.totalorder %v5147_v7, %v1743_v36  ;;  %vm1750_vm8 = vcmp.eq.s32.totalorder %v1735_v35, %v1739_v32 }
 0x2ab   :  { %4163 = vxpose.xlu0.b32.start [1/4] (short) %v4162_v43, 128  ;;  %v3359_v47 = vsel %vm1745_vm7, 1.0, %v4827_v38  ;;  %vm1777_vm9 = vcmp.eq.s32.totalorder %v5147_v7, %v1775_v37  ;;  %vm1747_vm10 = vcmp.eq.s32.totalorder %v1733_v30, %v1743_v36  ;;  %vm1782_vm11 = vcmp.eq.s32.totalorder %v1735_v35, %v1771_v33 }
 0x2ac   :  { %v3367_v48 = vsel %vm1777_vm9, 1.0, %v4827_v38  ;;  %v3361_v49 = vsel %vm1747_vm10, 1.0, %v4827_v38  ;;  %vm1779_vm12 = vcmp.eq.s32.totalorder %v1733_v30, %v1775_v37  ;;  %vm1749_vm13 = vcmp.eq.s32.totalorder %v1734_v34, %v1743_v36 }
 0x2ad   :  { %3897 = vmatpush3.bf16.msra.mxu0 %v4389_v61  ;;  %v4250_v50 = vpack.i.bf16 %v3367_v48, %v3359_v47  ;;  %v3369_v51 = vsel %vm1779_vm12, 1.0, %v4827_v38  ;;  %vm1781_vm14 = vcmp.eq.s32.totalorder %v1734_v34, %v1775_v37  ;;  %v4166_v52 = vpack.i.bf16 %v3370_v46, %v3362_v45 }
 0x2ae   :  { %3898 = vmatprep.subr.bf16.mxu0 %v4390_v62  ;;  %v3364_v53 = vsel %vm1750_vm8, 1.0, %v4827_v38  ;;  %v3372_v54 = vsel %vm1782_vm11, 1.0, %v4827_v38  ;;  %v4252_v55 = vpack.i.bf16 %v3369_v51, %v3361_v49  ;;  %v3363_v56 = vsel %vm1749_vm13, 1.0, %v4827_v38 }
 0x2af   :  { %4165 = vxpose.xlu0.b32.cont [2/4] (short) %v4164_v44, 128  ;;  %4251 = vxpose.xlu1.b32.start [1/4] (short) %v4250_v50, 128  ;;  %v3371_v57 = vsel %vm1781_vm14, 1.0, %v4827_v38  ;;  %vm1751_vm15 = vcmp.eq.s32.totalorder %v1735_v35, %v1743_v36  ;;  %vm1783_vm1 = vcmp.eq.s32.totalorder %v1735_v35, %v1775_v37  ;;  %v4168_v58 = vpack.i.bf16 %v3372_v54, %v3364_v53 }
 0x2b0   :  { %v4254_v59 = vpack.i.bf16 %v3371_v57, %v3363_v56  ;;  %v3365_v60 = vsel %vm1751_vm15, 1.0, %v4827_v38  ;;  %v3373_v61 = vsel %vm1783_vm1, 1.0, %v4827_v38 }
 0x2b1   :  { %3899 = vmatpush3.bf16.msra.mxu0 %v4390_v62  ;;  %v4256_v62 = vpack.i.bf16 %v3373_v61, %v3365_v60 }
 0x2b2   :  { %v3848_v2 = vpop.f32.mrf.mxu1  ;;  %3900 = vmatprep.subr.bf16.mxu0 %v4391_v0 }
 0x2b3   :  { %v1216_v16 = vadd.f32 %v3848_v2, %v3828_v63  ;;  %4167 = vxpose.xlu0.b32.cont [3/4] (short) %v4166_v52, 128  ;;  %4253 = vxpose.xlu1.b32.cont [2/4] (short) %v4252_v55, 128 }
 0x2b4   :  { %v1207_v8 = vpop.f32.mrf.mxu1 }
 0x2b5   :  { %3901 = vmatpush3.bf16.msra.mxu0 %v4391_v0  ;;  %v1208_v11 = vadd.f32 %v1207_v8, %v1110_v1  ;;  %v1231_v15 = vadd.f32 %v3321_v18, %v1216_v16  ;;  %v3322_v1 = vld [vmem:[%s5496_s15] ss:$0 sm:$0xff] }
 0x2b6   :  { %v3849_v9 = vpop.f32.mrf.mxu1  ;;  %3902 = vmatprep.subr.bf16.mxu0 %v4392_v3 }
 0x2b7   :  { %v1219_v13 = vadd.f32 %v3849_v9, %v3829_v6  ;;  %v1229_v21 = vadd.f32 %v3321_v18, %v1208_v11  ;;  %4169 = vxpose.xlu0.b32.end [4/4] (short) %v4168_v58, 128  ;;  %4255 = vxpose.xlu1.b32.cont [3/4] (short) %v4254_v59, 128 }
 0x2b8   :  { %v1210_v17 = vpop.f32.mrf.mxu1 }
 0x2b9   :  { %v1211_v19 = vadd.f32 %v1210_v17, %v1113_v14  ;;  %3903 = vmatpush3.bf16.msra.mxu0 %v4392_v3  ;;  %v1232_v20 = vadd.f32 %v3321_v18, %v1219_v13 }
 0x2ba   :  { %3904 = vmatprep.subr.bf16.mxu0 %v4393_v10 }
 0x2bb   :  { %v1230_v12 = vadd.f32 %v3321_v18, %v1211_v19  ;;  %v1498_v23 = vpack.c.bf16 %v1232_v20, %v1231_v15  ;;  %4257 = vxpose.xlu1.b32.end [4/4] (short) %v4256_v62, 128  ;;  %v4403_v19 = vld [vmem:[#allocation26 + $0x30] sm:$0xff]   ;;  %v4404_v20 = vld [vmem:[#allocation26 + $0x28] sm:$0xff]  }
 0x2bc   :  { %v4407_v15 = vld [vmem:[#allocation26 + $0x10] sm:$0xff]  }
 0x2bd   :  { %3905 = vmatpush3.bf16.msra.mxu0 %v4393_v10  ;;  %v1497_v22 = vpack.c.bf16 %v1230_v12, %v1229_v21  ;;  %v4405_v21 = vld [vmem:[#allocation26 + $0x20] sm:$0xff]   ;;  %v4406_v12 = vld [vmem:[#allocation26 + $0x18] sm:$0xff]  }
 0x2bf   :  { %3906 = vmatprep.mubr.bf16.mxu0 %v1497_v22 }
 0x2c0   :  { %3907 = vmatmul.mubr.bf16.vlgmr.msra.gmra.mxu0 %v1498_v23  ;;  %v4408_v23 = vld [vmem:[#allocation26 + $0x8] sm:$0xff]  }
 0x327   :  { %v4170_v38 = vpop.trf.xlu0 }
 0x328   :  { %v4174_v39 = vunpack.i.h.bf16 %v4170_v38  ;;  %v4171_v40 = vunpack.i.l.bf16 %v4170_v38 }
 0x32a   :  { %3938 = vmatprep.mubr.msk.f32.mxu0 %vm332_vm0, %v4171_v40 }
 0x32b   :  { %v5170_v41 = vpop.trf.xlu0  ;;  %v5198_v55 = vpop.trf.xlu1 }
 0x32f   :  { %v5172_v42 = vpop.trf.xlu0  ;;  %v5202_v57 = vpop.trf.xlu1 }
 0x333   :  { %v5174_v43 = vpop.trf.xlu0  ;;  %v5204_v58 = vpop.trf.xlu1 }
 0x337   :  { %v5176_v44 = vpop.trf.xlu0  ;;  %v5206_v59 = vpop.trf.xlu1 }
 0x33b   :  { %v5178_v45 = vpop.trf.xlu0  ;;  %v5208_v60 = vpop.trf.xlu1 }
 0x33f   :  { %v5180_v46 = vpop.trf.xlu0  ;;  %v5210_v61 = vpop.trf.xlu1 }
 0x343   :  { %v5182_v47 = vpop.trf.xlu0  ;;  %v5212_v62 = vpop.trf.xlu1 }
 0x347   :  { %v5184_v48 = vpop.trf.xlu0 }
 0x34b   :  { %v5186_v49 = vpop.trf.xlu0 }
 0x34f   :  { %v5188_v50 = vpop.trf.xlu0 }
 0x353   :  { %v5190_v51 = vpop.trf.xlu0 }
 0x357   :  { %v5192_v52 = vpop.trf.xlu0 }
 0x35b   :  { %v5194_v53 = vpop.trf.xlu0 }
 0x35f   :  { %v5196_v54 = vpop.trf.xlu0 }
 0x360   :  { %v3868_v63 = vpop.f32.mrf.mxu0 }
 0x361   :  { %v1349_v8 = vadd.f32 %v3868_v63, %v3322_v1  ;;  %v5214_v63 = vpop.trf.xlu1 }
 0x362   :  { %v1340_v0 = vpop.f32.mrf.mxu0 }
 0x363   :  { %v1341_v3 = vadd.f32 %v3322_v1, %v1340_v0  ;;  %v1357_v16 = vmax.f32 %v1349_v8, 0.0  ;;  %v5200_v56 = vpop.trf.xlu0 }
 0x364   :  { %v3869_v2 = vpop.f32.mrf.mxu0 }
 0x365   :  { %v1352_v6 = vadd.f32 %v3869_v2, %v3322_v1  ;;  %v1355_v13 = vmax.f32 %v1341_v3, 0.0  ;;  %v5216_v0 = vpop.trf.xlu1 }
 0x366   :  { %v1343_v9 = vpop.f32.mrf.mxu0 }
 0x367   :  { %v1344_v10 = vadd.f32 %v3322_v1, %v1343_v9  ;;  %v1358_v11 = vmax.f32 %v1352_v6, 0.0 }
 0x369   :  { %v1356_v14 = vmax.f32 %v1344_v10, 0.0  ;;  %v1376_v18 = vpack.c.bf16 %v1358_v11, %v1357_v16  ;;  %v5218_v1 = vpop.trf.xlu1 }
 0x36b   :  { %v1375_v17 = vpack.c.bf16 %v1356_v14, %v1355_v13  ;;  %v3331_v14 = vld [vmem:[%s5498_s17] ss:$0 sm:$0xff] }
 0x36d   :  { %3886 = vmatprep.mubr.bf16.mxu1 %v1375_v17  ;;  %v5220_v2 = vpop.trf.xlu1 }
 0x36e   :  { %3887 = vmatmul.mubr.bf16.vlgmr.msra.gmra.mxu1 %v1376_v18 }
 0x36f   :  { %3911 = vmatpush3.bf16.msra.mxu1 %v5143_v4  ;;  %v4409_v4 = vld [vmem:[#allocation26] sm:$0xff]  }
 0x370   :  { %3912 = vmatprep.subr.bf16.mxu1 %v4403_v19 }
 0x371   :  { %v5222_v3 = vpop.trf.xlu1 }
 0x373   :  { %3913 = vmatpush3.bf16.msra.mxu1 %v4403_v19 }
 0x374   :  { %3914 = vmatprep.subr.bf16.mxu1 %v4404_v20 }
 0x375   :  { %v5224_v6 = vpop.trf.xlu1 }
 0x377   :  { %3915 = vmatpush3.bf16.msra.mxu1 %v4404_v20 }
 0x378   :  { %3916 = vmatprep.subr.bf16.mxu1 %v4405_v21 }
 0x379   :  { %v5226_v8 = vpop.trf.xlu1 }
 0x37b   :  { %3917 = vmatpush3.bf16.msra.mxu1 %v4405_v21  ;;  %v4176_v21 = vunpack.i.l.bf16 %v5170_v41 }
 0x37c   :  { %3918 = vmatprep.subr.bf16.mxu1 %v4406_v12 }
 0x37d   :  { %v5228_v9 = vpop.trf.xlu1 }
 0x37f   :  { %3919 = vmatpush3.bf16.msra.mxu1 %v4406_v12 }
 0x380   :  { %v3908_v22 = vpop.f32.mrf.mxu0  ;;  %3920 = vmatprep.subr.bf16.mxu1 %v4407_v15 }
 0x381   :  { %v1597_v29 = vadd.f32 %v3908_v22, %v3340_v25  ;;  %v5230_v10 = vpop.trf.xlu1  ;;  %v4181_v22 = vunpack.i.l.bf16 %v5172_v42 }
 0x382   :  { %v1588_v24 = vpop.f32.mrf.mxu0 }
 0x383   :  { %3921 = vmatpush3.bf16.msra.mxu1 %v4407_v15  ;;  %v1589_v27 = vadd.f32 %v3340_v25, %v1588_v24  ;;  %v1605_v35 = vmax.f32 %v1597_v29, 0.0  ;;  %v4410_v15 = vld [vmem:[#allocation27 + $0x38] sm:$0xff]   ;;  %v4186_v24 = vunpack.i.l.bf16 %v5174_v43  ;;  %v4211_v29 = vunpack.i.l.bf16 %v5184_v48 }
 0x384   :  { %v3909_v26 = vpop.f32.mrf.mxu0  ;;  %3922 = vmatprep.subr.bf16.mxu1 %v4408_v23 }
 0x385   :  { %v1600_v28 = vadd.f32 %v3909_v26, %v3340_v25  ;;  %v1603_v33 = vmax.f32 %v1589_v27, 0.0  ;;  %v4412_v26 = vld [vmem:[#allocation27 + $0x28] sm:$0xff]   ;;  %v4201_v27 = vunpack.i.l.bf16 %v5180_v46 }
 0x386   :  { %v1591_v30 = vpop.f32.mrf.mxu0 }
 0x387   :  { %v1592_v31 = vadd.f32 %v3340_v25, %v1591_v30  ;;  %3923 = vmatpush3.bf16.msra.mxu1 %v4408_v23  ;;  %v1606_v32 = vmax.f32 %v1600_v28, 0.0  ;;  %v4411_v23 = vld [vmem:[#allocation27 + $0x30] sm:$0xff]   ;;  %v4191_v25 = vunpack.i.l.bf16 %v5176_v44  ;;  %v4206_v28 = vunpack.i.l.bf16 %v5182_v47 }
 0x388   :  { %3924 = vmatprep.subr.bf16.mxu1 %v4409_v4  ;;  %v4216_v30 = vunpack.i.l.bf16 %v5186_v49 }
 0x389   :  { %v1604_v34 = vmax.f32 %v1592_v31, 0.0  ;;  %v1624_v37 = vpack.c.bf16 %v1606_v32, %v1605_v35  ;;  %v4221_v31 = vunpack.i.l.bf16 %v5188_v50  ;;  %v4226_v32 = vunpack.i.l.bf16 %v5190_v51 }
 0x38b   :  { %v1623_v36 = vpack.c.bf16 %v1604_v34, %v1603_v33  ;;  %3925 = vmatpush3.bf16.msra.mxu1 %v4409_v4  ;;  %v4196_v4 = vunpack.i.l.bf16 %v5178_v45  ;;  %v4231_v33 = vunpack.i.l.bf16 %v5192_v52 }
 0x38d   :  { %3926 = vmatprep.mubr.bf16.mxu1 %v1623_v36  ;;  %v4236_v36 = vunpack.i.l.bf16 %v5194_v53 }
 0x38e   :  { %3927 = vmatmul.mubr.bf16.vlgmr.msra.gmra.mxu1 %v1624_v37  ;;  %v3349_v37 = vld [vmem:[%s5502_s21] ss:$0 sm:$0xff] }
 0x38f   :  { %3994 = vmatprep.mubr.msk.f32.mxu1 %vm332_vm0, %v4174_v39  ;;  %v4241_v39 = vunpack.i.l.bf16 %v5196_v54 }
 0x42e   :  { %v3888_v11 = vpop.f32.mrf.mxu1 }
 0x42f   :  { %v1475_v19 = vadd.f32 %v3888_v11, %v3331_v14 }
 0x430   :  { %v1466_v13 = vpop.f32.mrf.mxu1 }
 0x431   :  { %v1467_v12 = vadd.f32 %v3331_v14, %v1466_v13 }
 0x432   :  { %v3889_v16 = vpop.f32.mrf.mxu1 }
 0x433   :  { %v1478_v17 = vadd.f32 %v3889_v16, %v3331_v14  ;;  %v4259_v16 = vunpack.i.l.bf16 %v5198_v55 }
 0x434   :  { %v1469_v18 = vpop.f32.mrf.mxu1 }
 0x435   :  { %3930 = vmatprep.subr.mxu0 %v1478_v17  ;;  %v1470_v20 = vadd.f32 %v3331_v14, %v1469_v18  ;;  %v4246_v14 = vunpack.i.l.bf16 %v5200_v56 }
 0x436   :  { %3931 = vmatpush3.msra.mxu0 %v1478_v17 }
 0x437   :  { %3932 = vmatprep.subr.mxu0 %v1475_v19 }
 0x438   :  { %3933 = vmatpush3.msra.mxu0 %v1475_v19  ;;  %v4264_v19 = vunpack.i.l.bf16 %v5202_v57 }
 0x439   :  { %3934 = vmatprep.subr.mxu0 %v1470_v20 }
 0x43a   :  { %3935 = vmatpush3.msra.mxu0 %v1470_v20  ;;  %v4269_v20 = vunpack.i.l.bf16 %v5204_v58 }
 0x43b   :  { %3936 = vmatprep.subr.mxu0 %v1467_v12 }
 0x43c   :  { %3937 = vmatpush3.msra.mxu0 %v1467_v12  ;;  %v4184_v12 = vunpack.i.h.bf16 %v5172_v42  ;;  %v4284_v42 = vunpack.i.l.bf16 %v5210_v61 }
 0x43d   :  { %3939 = vmatmul.mubr.msk.f32.vlgmr.msra.gmra.mxu0 %vm332_vm0, %v4176_v21  ;;  %4042 = vmatprep.subr.bf16.mxu0 %v4410_v15  ;;  %v4179_v21 = vunpack.i.h.bf16 %v5170_v41  ;;  %v4194_v41 = vunpack.i.h.bf16 %v5176_v44  ;;  %v4299_v44 = vunpack.i.l.bf16 %v5216_v0 }
 0x43e   :  { %3941 = vmatprep.mubr.msk.f32.mxu0 %vm332_vm0, %v4181_v22  ;;  %4043 = vmatpush3.bf16.msra.mxu0 %v4410_v15  ;;  %v4274_v15 = vunpack.i.l.bf16 %v5206_v59  ;;  %v4279_v22 = vunpack.i.l.bf16 %v5208_v60 }
 0x43f   :  { %4044 = vmatprep.subr.bf16.mxu0 %v4411_v23 }
 0x441   :  { %3942 = vmatmul.mubr.msk.f32.gmra.mxu0 %vm332_vm0, %v4186_v24  ;;  %v4289_v24 = vunpack.i.l.bf16 %v5212_v62 }
 0x442   :  { %3944 = vmatprep.mubr.msk.f32.mxu0 %vm332_vm0, %v4191_v25  ;;  %4045 = vmatpush3.bf16.msra.mxu0 %v4411_v23  ;;  %v4189_v23 = vunpack.i.h.bf16 %v5174_v43  ;;  %v4199_v25 = vunpack.i.h.bf16 %v5178_v45  ;;  %v4294_v43 = vunpack.i.l.bf16 %v5214_v63  ;;  %v4304_v45 = vunpack.i.l.bf16 %v5218_v1 }
 0x443   :  { %4046 = vmatprep.subr.bf16.mxu0 %v4412_v26 }
 0x445   :  { %3945 = vmatmul.mubr.msk.f32.gmra.mxu0 %vm332_vm0, %v4196_v4  ;;  %v4209_v4 = vunpack.i.h.bf16 %v5182_v47  ;;  %v4314_v47 = vunpack.i.l.bf16 %v5222_v3 }
 0x446   :  { %3947 = vmatprep.mubr.msk.f32.mxu0 %vm332_vm0, %v4201_v27  ;;  %4047 = vmatpush3.bf16.msra.mxu0 %v4412_v26  ;;  %v4204_v26 = vunpack.i.h.bf16 %v5180_v46  ;;  %v4214_v27 = vunpack.i.h.bf16 %v5184_v48  ;;  %v4309_v46 = vunpack.i.l.bf16 %v5220_v2  ;;  %v4319_v48 = vunpack.i.l.bf16 %v5224_v6 }
 0x449   :  { %3948 = vmatmul.mubr.msk.f32.gmra.mxu0 %vm332_vm0, %v4206_v28  ;;  %v4219_v28 = vunpack.i.h.bf16 %v5186_v49  ;;  %v4324_v49 = vunpack.i.l.bf16 %v5226_v8 }
 0x44a   :  { %3950 = vmatprep.mubr.msk.f32.mxu0 %vm332_vm0, %v4211_v29  ;;  %v4224_v29 = vunpack.i.h.bf16 %v5188_v50  ;;  %v4244_v50 = vunpack.i.h.bf16 %v5196_v54  ;;  %v4262_v54 = vunpack.i.h.bf16 %v5198_v55  ;;  %v4282_v55 = vunpack.i.h.bf16 %v5208_v60 }
 0x44b   :  { %v4307_v60 = vunpack.i.h.bf16 %v5218_v1  ;;  %v4327_v1 = vunpack.i.h.bf16 %v5226_v8  ;;  %v4420_v8 = vld [vmem:[#allocation29 + $0x28] sm:$0xff]  }
 0x44d   :  { %3951 = vmatmul.mubr.msk.f32.gmra.mxu0 %vm332_vm0, %v4216_v30  ;;  %v4229_v30 = vunpack.i.h.bf16 %v5190_v51  ;;  %v4249_v51 = vunpack.i.h.bf16 %v5200_v56  ;;  %v4272_v56 = vunpack.i.h.bf16 %v5204_v58  ;;  %v4414_v58 = vld [vmem:[#allocation27 + $0x18] sm:$0xff]  }
 0x44e   :  { %v3928_v34 = vpop.f32.mrf.mxu1  ;;  %3953 = vmatprep.mubr.msk.f32.mxu0 %vm332_vm0, %v4221_v31  ;;  %v4234_v31 = vunpack.i.h.bf16 %v5192_v52  ;;  %v4334_v52 = vunpack.i.l.bf16 %v5230_v10 }
 0x44f   :  { %v1723_v13 = vadd.f32 %v3928_v34, %v3349_v37  ;;  %v4413_v34 = vld [vmem:[#allocation27 + $0x20] sm:$0xff]  }
 0x450   :  { %v1714_v35 = vpop.f32.mrf.mxu1  ;;  %4048 = vmatprep.subr.bf16.mxu0 %v4413_v34 }
 0x451   :  { %3954 = vmatmul.mubr.msk.f32.gmra.mxu0 %vm332_vm0, %v4226_v32  ;;  %v1715_v18 = vadd.f32 %v3349_v37, %v1714_v35  ;;  %v4329_v32 = vunpack.i.l.bf16 %v5228_v9  ;;  %v4277_v35 = vunpack.i.h.bf16 %v5206_v59  ;;  %v4302_v59 = vunpack.i.h.bf16 %v5216_v0 }
 0x452   :  { %v3929_v38 = vpop.f32.mrf.mxu1  ;;  %3956 = vmatprep.mubr.msk.f32.mxu0 %vm332_vm0, %v4231_v33  ;;  %v4239_v33 = vunpack.i.h.bf16 %v5194_v53  ;;  %v4267_v53 = vunpack.i.h.bf16 %v5202_v57  ;;  %4049 = vmatpush3.bf16.msra.mxu0 %v4413_v34  ;;  %v4292_v57 = vunpack.i.h.bf16 %v5212_v62  ;;  %v4415_v62 = vld [vmem:[#allocation27 + $0x10] sm:$0xff]   ;;  %v4332_v0 = vunpack.i.h.bf16 %v5228_v9 }
 0x453   :  { %v1726_v40 = vadd.f32 %v3929_v38, %v3349_v37  ;;  %4050 = vmatprep.subr.bf16.mxu0 %v4414_v58  ;;  %v4317_v38 = vunpack.i.h.bf16 %v5222_v3  ;;  %v4417_v3 = vld [vmem:[#allocation27] sm:$0xff]   ;;  %v4419_v9 = vld [vmem:[#allocation29 + $0x30] sm:$0xff]  }
 0x454   :  { %v1717_v11 = vpop.f32.mrf.mxu1 }
 0x455   :  { %3986 = vmatprep.subr.mxu1 %v1726_v40  ;;  %3957 = vmatmul.mubr.msk.f32.gmra.mxu0 %vm332_vm0, %v4236_v36  ;;  %v1718_v17 = vadd.f32 %v3349_v37, %v1717_v11  ;;  %v4287_v36 = vunpack.i.h.bf16 %v5210_v61  ;;  %v4297_v37 = vunpack.i.h.bf16 %v5214_v63  ;;  %v4312_v61 = vunpack.i.h.bf16 %v5220_v2  ;;  %v4423_v11 = vld [vmem:[#allocation29 + $0x10] sm:$0xff]  }
 0x456   :  { %3987 = vmatpush3.msra.mxu1 %v1726_v40  ;;  %3959 = vmatprep.mubr.msk.f32.mxu0 %vm332_vm0, %v4241_v39  ;;  %v4322_v63 = vunpack.i.h.bf16 %v5224_v6  ;;  %v4337_v2 = vunpack.i.h.bf16 %v5230_v10  ;;  %v4416_v39 = vld [vmem:[#allocation27 + $0x8] sm:$0xff]   ;;  %v4418_v6 = vld [vmem:[#allocation29 + $0x38] sm:$0xff]   ;;  %v4421_v10 = vld [vmem:[#allocation29 + $0x20] sm:$0xff]  }
 0x457   :  { %3988 = vmatprep.subr.mxu1 %v1723_v13  ;;  %4051 = vmatpush3.bf16.msra.mxu0 %v4414_v58  ;;  %v4422_v40 = vld [vmem:[#allocation29 + $0x18] sm:$0xff]  }
 0x458   :  { %3989 = vmatpush3.msra.mxu1 %v1723_v13  ;;  %4052 = vmatprep.subr.bf16.mxu0 %v4415_v62  ;;  %v4424_v13 = vld [vmem:[#allocation29 + $0x8] sm:$0xff]  }
 0x459   :  { %3990 = vmatprep.subr.mxu1 %v1718_v17  ;;  %3960 = vmatmul.mubr.msk.f32.gmra.mxu0 %vm332_vm0, %v4246_v14 }
 0x45a   :  { %3991 = vmatpush3.msra.mxu1 %v1718_v17  ;;  %3962 = vmatprep.mubr.msk.f32.mxu0 %vm332_vm0, %v4259_v16 }
 0x45b   :  { %3992 = vmatprep.subr.mxu1 %v1715_v18  ;;  %4053 = vmatpush3.bf16.msra.mxu0 %v4415_v62 }
 0x45c   :  { %3993 = vmatpush3.msra.mxu1 %v1715_v18  ;;  %4054 = vmatprep.subr.bf16.mxu0 %v4416_v39 }
 0x45d   :  { %3995 = vmatmul.mubr.msk.f32.vlgmr.msra.gmra.mxu1 %vm332_vm0, %v4179_v21  ;;  %3963 = vmatmul.mubr.msk.f32.gmra.mxu0 %vm332_vm0, %v4264_v19 }
 0x45e   :  { %3997 = vmatprep.mubr.msk.f32.mxu1 %vm332_vm0, %v4184_v12  ;;  %3965 = vmatprep.mubr.msk.f32.mxu0 %vm332_vm0, %v4269_v20 }
 0x45f   :  { %4055 = vmatpush3.bf16.msra.mxu0 %v4416_v39  ;;  %4090 = vmatprep.subr.bf16.mxu1 %v4418_v6 }
 0x460   :  { %4056 = vmatprep.subr.bf16.mxu0 %v4417_v3  ;;  %4091 = vmatpush3.bf16.msra.mxu1 %v4418_v6 }
 0x461   :  { %3998 = vmatmul.mubr.msk.f32.gmra.mxu1 %vm332_vm0, %v4189_v23  ;;  %3966 = vmatmul.mubr.msk.f32.gmra.mxu0 %vm332_vm0, %v4274_v15 }
 0x462   :  { %4000 = vmatprep.mubr.msk.f32.mxu1 %vm332_vm0, %v4194_v41  ;;  %3968 = vmatprep.mubr.msk.f32.mxu0 %vm332_vm0, %v4279_v22 }
 0x463   :  { %4057 = vmatpush3.bf16.msra.mxu0 %v4417_v3  ;;  %4092 = vmatprep.subr.bf16.mxu1 %v4419_v9 }
 0x464   :  { %4093 = vmatpush3.bf16.msra.mxu1 %v4419_v9 }
 0x465   :  { %4001 = vmatmul.mubr.msk.f32.gmra.mxu1 %vm332_vm0, %v4199_v25  ;;  %3969 = vmatmul.mubr.msk.f32.gmra.mxu0 %vm332_vm0, %v4284_v42 }
 0x466   :  { %4003 = vmatprep.mubr.msk.f32.mxu1 %vm332_vm0, %v4204_v26  ;;  %3971 = vmatprep.mubr.msk.f32.mxu0 %vm332_vm0, %v4289_v24 }
 0x467   :  { %4094 = vmatprep.subr.bf16.mxu1 %v4420_v8 }
 0x468   :  { %4095 = vmatpush3.bf16.msra.mxu1 %v4420_v8 }
 0x469   :  { %4004 = vmatmul.mubr.msk.f32.gmra.mxu1 %vm332_vm0, %v4209_v4  ;;  %3972 = vmatmul.mubr.msk.f32.gmra.mxu0 %vm332_vm0, %v4294_v43 }
 0x46a   :  { %4006 = vmatprep.mubr.msk.f32.mxu1 %vm332_vm0, %v4214_v27  ;;  %3974 = vmatprep.mubr.msk.f32.mxu0 %vm332_vm0, %v4299_v44 }
 0x46b   :  { %4096 = vmatprep.subr.bf16.mxu1 %v4421_v10 }
 0x46c   :  { %4097 = vmatpush3.bf16.msra.mxu1 %v4421_v10 }
 0x46d   :  { %4007 = vmatmul.mubr.msk.f32.gmra.mxu1 %vm332_vm0, %v4219_v28  ;;  %3975 = vmatmul.mubr.msk.f32.gmra.mxu0 %vm332_vm0, %v4304_v45 }
 0x46e   :  { %4009 = vmatprep.mubr.msk.f32.mxu1 %vm332_vm0, %v4224_v29  ;;  %3977 = vmatprep.mubr.msk.f32.mxu0 %vm332_vm0, %v4309_v46 }
 0x46f   :  { %4098 = vmatprep.subr.bf16.mxu1 %v4422_v40 }
 0x470   :  { %4099 = vmatpush3.bf16.msra.mxu1 %v4422_v40 }
 0x471   :  { %4010 = vmatmul.mubr.msk.f32.gmra.mxu1 %vm332_vm0, %v4229_v30  ;;  %3978 = vmatmul.mubr.msk.f32.gmra.mxu0 %vm332_vm0, %v4314_v47 }
 0x472   :  { %4012 = vmatprep.mubr.msk.f32.mxu1 %vm332_vm0, %v4234_v31  ;;  %3980 = vmatprep.mubr.msk.f32.mxu0 %vm332_vm0, %v4319_v48 }
 0x473   :  { %4100 = vmatprep.subr.bf16.mxu1 %v4423_v11 }
 0x474   :  { %4101 = vmatpush3.bf16.msra.mxu1 %v4423_v11 }
 0x475   :  { %4013 = vmatmul.mubr.msk.f32.gmra.mxu1 %vm332_vm0, %v4239_v33  ;;  %3981 = vmatmul.mubr.msk.f32.gmra.mxu0 %vm332_vm0, %v4324_v49 }
 0x476   :  { %4015 = vmatprep.mubr.msk.f32.mxu1 %vm332_vm0, %v4244_v50  ;;  %3983 = vmatprep.mubr.msk.f32.mxu0 %vm332_vm0, %v4329_v32 }
 0x477   :  { %4102 = vmatprep.subr.bf16.mxu1 %v4424_v13 }
 0x478   :  { %4103 = vmatpush3.bf16.msra.mxu1 %v4424_v13 }
 0x479   :  { %4016 = vmatmul.mubr.msk.f32.gmra.mxu1 %vm332_vm0, %v4249_v51  ;;  %3984 = vmatmul.mubr.msk.f32.gmra.mxu0 %vm332_vm0, %v4334_v52 }
 0x47a   :  { %4018 = vmatprep.mubr.msk.f32.mxu1 %vm332_vm0, %v4262_v54 }
 0x47d   :  { %4019 = vmatmul.mubr.msk.f32.gmra.mxu1 %vm332_vm0, %v4267_v53 }
 0x47e   :  { %4021 = vmatprep.mubr.msk.f32.mxu1 %vm332_vm0, %v4272_v56 }
 0x481   :  { %4022 = vmatmul.mubr.msk.f32.gmra.mxu1 %vm332_vm0, %v4277_v35 }
 0x482   :  { %4024 = vmatprep.mubr.msk.f32.mxu1 %vm332_vm0, %v4282_v55 }
 0x485   :  { %4025 = vmatmul.mubr.msk.f32.gmra.mxu1 %vm332_vm0, %v4287_v36 }
 0x486   :  { %4027 = vmatprep.mubr.msk.f32.mxu1 %vm332_vm0, %v4292_v57 }
 0x489   :  { %4028 = vmatmul.mubr.msk.f32.gmra.mxu1 %vm332_vm0, %v4297_v37 }
 0x48a   :  { %4030 = vmatprep.mubr.msk.f32.mxu1 %vm332_vm0, %v4302_v59 }
 0x48d   :  { %4031 = vmatmul.mubr.msk.f32.gmra.mxu1 %vm332_vm0, %v4307_v60 }
 0x48e   :  { %4033 = vmatprep.mubr.msk.f32.mxu1 %vm332_vm0, %v4312_v61 }
 0x491   :  { %4034 = vmatmul.mubr.msk.f32.gmra.mxu1 %vm332_vm0, %v4317_v38 }
 0x492   :  { %4036 = vmatprep.mubr.msk.f32.mxu1 %vm332_vm0, %v4322_v63 }
 0x495   :  { %4037 = vmatmul.mubr.msk.f32.gmra.mxu1 %vm332_vm0, %v4327_v1 }
 0x496   :  { %4039 = vmatprep.mubr.msk.f32.mxu1 %vm332_vm0, %v4332_v0 }
 0x499   :  { %4040 = vmatmul.mubr.msk.f32.gmra.mxu1 %vm332_vm0, %v4337_v2  ;;  %vm3242_vm0 = vcmp.lt.s32.totalorder %v1731_v5, 256 }
 0x4fd   :  { %v3940_v14 = vpop.f32.mrf.mxu0 }
 0x4ff   :  { %v2026_v16 = vpop.f32.mrf.mxu0 }
 0x501   :  { %v3943_v17 = vpop.f32.mrf.mxu0 }
 0x503   :  { %v2036_v18 = vpop.f32.mrf.mxu0 }
 0x505   :  { %v3946_v19 = vpop.f32.mrf.mxu0 }
 0x507   :  { %v2046_v20 = vpop.f32.mrf.mxu0 }
 0x509   :  { %v3949_v21 = vpop.f32.mrf.mxu0 }
 0x50b   :  { %v2056_v12 = vpop.f32.mrf.mxu0 }
 0x50d   :  { %v3952_v15 = vpop.f32.mrf.mxu0 }
 0x50f   :  { %v2066_v22 = vpop.f32.mrf.mxu0 }
 0x511   :  { %v3955_v23 = vpop.f32.mrf.mxu0 }
 0x513   :  { %v2076_v41 = vpop.f32.mrf.mxu0 }
 0x515   :  { %v3958_v42 = vpop.f32.mrf.mxu0 }
 0x517   :  { %v2086_v44 = vpop.f32.mrf.mxu0 }
 0x519   :  { %v3961_v29 = vpop.f32.mrf.mxu0 }
 0x51b   :  { %v2096_v50 = vpop.f32.mrf.mxu0 }
 0x51d   :  { %v3996_v24 = vpop.f32.mrf.mxu1  ;;  %v3964_v53 = vpop.f32.mrf.mxu0 }
 0x51e   :  { %v2571_v26 = vmul.f32 %v3996_v24, %v3940_v14 }
 0x51f   :  { %v2411_v25 = vpop.f32.mrf.mxu1  ;;  %v2106_v57 = vpop.f32.mrf.mxu0 }
 0x520   :  { %v2570_v43 = vmul.f32 %v2411_v25, %v2026_v16 }
 0x521   :  { %v3999_v4 = vpop.f32.mrf.mxu1  ;;  %v3967_v59 = vpop.f32.mrf.mxu0 }
 0x522   :  { %v2618_v27 = vpack.c.bf16 %v2571_v26, %v2570_v43  ;;  %v2573_v46 = vmul.f32 %v3999_v4, %v3943_v17 }
 0x523   :  { %v2421_v45 = vpop.f32.mrf.mxu1  ;;  %v2116_v0 = vpop.f32.mrf.mxu0 }
 0x524   :  { %v2572_v28 = vmul.f32 %v2421_v45, %v2036_v18  ;;  %4058 = vmatprep.mubr.bf16.mxu0 %v2618_v27 }
 0x525   :  { %v4002_v47 = vpop.f32.mrf.mxu1  ;;  %v3970_v3 = vpop.f32.mrf.mxu0 }
 0x526   :  { %v2619_v48 = vpack.c.bf16 %v2573_v46, %v2572_v28  ;;  %v2575_v31 = vmul.f32 %v4002_v47, %v3946_v19 }
 0x527   :  { %v2431_v30 = vpop.f32.mrf.mxu1  ;;  %v2126_v11 = vpop.f32.mrf.mxu0 }
 0x528   :  { %v2574_v49 = vmul.f32 %v2431_v30, %v2046_v20  ;;  %4059 = vmatmul.mubr.bf16.vlgmr.msra.gmra.mxu0 %v2619_v48 }
 0x529   :  { %v4005_v32 = vpop.f32.mrf.mxu1  ;;  %v3973_v16 = vpop.f32.mrf.mxu0 }
 0x52a   :  { %v2620_v33 = vpack.c.bf16 %v2575_v31, %v2574_v49  ;;  %v2577_v52 = vmul.f32 %v4005_v32, %v3949_v21 }
 0x52b   :  { %v2441_v51 = vpop.f32.mrf.mxu1 }
 0x52c   :  { %v2576_v54 = vmul.f32 %v2441_v51, %v2056_v12  ;;  %4062 = vmatprep.mubr.bf16.mxu0 %v2620_v33  ;;  %v2136_v12 = vpop.f32.mrf.mxu0 }
 0x52d   :  { %v4008_v56 = vpop.f32.mrf.mxu1 }
 0x52e   :  { %v2621_v34 = vpack.c.bf16 %v2577_v52, %v2576_v54  ;;  %v2579_v55 = vmul.f32 %v4008_v56, %v3952_v15 }
 0x52f   :  { %v2451_v35 = vpop.f32.mrf.mxu1 }
 0x530   :  { %v2578_v36 = vmul.f32 %v2451_v35, %v2066_v22  ;;  %4063 = vmatmul.mubr.bf16.gmra.mxu0 %v2621_v34 }
 0x531   :  { %v4011_v58 = vpop.f32.mrf.mxu1 }
 0x532   :  { %v2622_v37 = vpack.c.bf16 %v2579_v55, %v2578_v36  ;;  %v2581_v61 = vmul.f32 %v4011_v58, %v3955_v23 }
 0x533   :  { %v2461_v60 = vpop.f32.mrf.mxu1 }
 0x534   :  { %v2580_v62 = vmul.f32 %v2461_v60, %v2076_v41  ;;  %4066 = vmatprep.mubr.bf16.mxu0 %v2622_v37  ;;  %v3976_v41 = vpop.f32.mrf.mxu0 }
 0x535   :  { %v4014_v38 = vpop.f32.mrf.mxu1 }
 0x536   :  { %v2623_v63 = vpack.c.bf16 %v2581_v61, %v2580_v62  ;;  %v2583_v2 = vmul.f32 %v4014_v38, %v3958_v42 }
 0x537   :  { %v2471_v1 = vpop.f32.mrf.mxu1 }
 0x538   :  { %v2582_v39 = vmul.f32 %v2471_v1, %v2086_v44  ;;  %4067 = vmatmul.mubr.bf16.gmra.mxu0 %v2623_v63  ;;  %v2146_v44 = vpop.f32.mrf.mxu0 }
 0x539   :  { %v4017_v6 = vpop.f32.mrf.mxu1 }
 0x53a   :  { %v2624_v9 = vpack.c.bf16 %v2583_v2, %v2582_v39  ;;  %v2585_v10 = vmul.f32 %v4017_v6, %v3961_v29  ;;  %v3979_v45 = vpop.f32.mrf.mxu0  ;;  %v5365_v39 = vld [vmem:[%s5504_s23] ss:$0 sm:$0xff] }
 0x53b   :  { %v2481_v8 = vpop.f32.mrf.mxu1 }
 0x53c   :  { %v2584_v40 = vmul.f32 %v2481_v8, %v2096_v50  ;;  %4070 = vmatprep.mubr.bf16.mxu0 %v2624_v9  ;;  %v2156_v30 = vpop.f32.mrf.mxu0 }
 0x53d   :  { %v4020_v13 = vpop.f32.mrf.mxu1 }
 0x53e   :  { %v2625_v14 = vpack.c.bf16 %v2585_v10, %v2584_v40  ;;  %v2587_v18 = vmul.f32 %v4020_v13, %v3964_v53  ;;  %v3982_v32 = vpop.f32.mrf.mxu0 }
 0x53f   :  { %v2491_v17 = vpop.f32.mrf.mxu1 }
 0x540   :  { %v2586_v19 = vmul.f32 %v2491_v17, %v2106_v57  ;;  %4071 = vmatmul.mubr.bf16.gmra.mxu0 %v2625_v14  ;;  %v2166_v56 = vpop.f32.mrf.mxu0 }
 0x541   :  { %v4023_v20 = vpop.f32.mrf.mxu1 }
 0x542   :  { %v2626_v21 = vpack.c.bf16 %v2587_v18, %v2586_v19  ;;  %v2589_v22 = vmul.f32 %v4023_v20, %v3967_v59  ;;  %v3985_v55 = vpop.f32.mrf.mxu0 }
 0x543   :  { %v2501_v15 = vpop.f32.mrf.mxu1 }
 0x544   :  { %v2588_v23 = vmul.f32 %v2501_v15, %v2116_v0  ;;  %4074 = vmatprep.mubr.bf16.mxu0 %v2626_v21  ;;  %v2176_v60 = vpop.f32.mrf.mxu0  ;;  %v4425_v0 = vld [vmem:[#allocation29] sm:$0xff]  }
 0x545   :  { %v4026_v42 = vpop.f32.mrf.mxu1  ;;  %4104 = vmatprep.subr.bf16.mxu1 %v4425_v0 }
 0x546   :  { %v2627_v24 = vpack.c.bf16 %v2589_v22, %v2588_v23  ;;  %v2591_v26 = vmul.f32 %v4026_v42, %v3970_v3  ;;  %4105 = vmatpush3.bf16.msra.mxu1 %v4425_v0 }
 0x547   :  { %v2511_v25 = vpop.f32.mrf.mxu1 }
 0x548   :  { %v2590_v43 = vmul.f32 %v2511_v25, %v2126_v11  ;;  %4075 = vmatmul.mubr.bf16.gmra.mxu0 %v2627_v24 }
 0x549   :  { %v4029_v4 = vpop.f32.mrf.mxu1 }
 0x54a   :  { %v2628_v27 = vpack.c.bf16 %v2591_v26, %v2590_v43  ;;  %v2593_v28 = vmul.f32 %v4029_v4, %v3973_v16 }
 0x54b   :  { %v2521_v46 = vpop.f32.mrf.mxu1 }
 0x54c   :  { %v2592_v29 = vmul.f32 %v2521_v46, %v2136_v12  ;;  %4078 = vmatprep.mubr.bf16.mxu0 %v2628_v27 }
 0x54d   :  { %v4032_v47 = vpop.f32.mrf.mxu1 }
 0x54e   :  { %v2629_v48 = vpack.c.bf16 %v2593_v28, %v2592_v29  ;;  %v2595_v49 = vmul.f32 %v4032_v47, %v3976_v41 }
 0x54f   :  { %v2531_v31 = vpop.f32.mrf.mxu1 }
 0x550   :  { %v2594_v50 = vmul.f32 %v2531_v31, %v2146_v44  ;;  %4079 = vmatmul.mubr.bf16.gmra.mxu0 %v2629_v48 }
 0x551   :  { %v4035_v33 = vpop.f32.mrf.mxu1 }
 0x552   :  { %v2630_v51 = vpack.c.bf16 %v2595_v49, %v2594_v50  ;;  %v2597_v54 = vmul.f32 %v4035_v33, %v3979_v45 }
 0x553   :  { %v2541_v52 = vpop.f32.mrf.mxu1 }
 0x554   :  { %v2596_v53 = vmul.f32 %v2541_v52, %v2156_v30  ;;  %4082 = vmatprep.mubr.bf16.mxu0 %v2630_v51 }
 0x555   :  { %v4038_v34 = vpop.f32.mrf.mxu1 }
 0x556   :  { %v2631_v35 = vpack.c.bf16 %v2597_v54, %v2596_v53  ;;  %v2599_v57 = vmul.f32 %v4038_v34, %v3982_v32 }
 0x557   :  { %v2551_v36 = vpop.f32.mrf.mxu1 }
 0x558   :  { %v2598_v58 = vmul.f32 %v2551_v36, %v2166_v56  ;;  %4083 = vmatmul.mubr.bf16.gmra.mxu0 %v2631_v35 }
 0x559   :  { %v4041_v37 = vpop.f32.mrf.mxu1 }
 0x55a   :  { %v2632_v59 = vpack.c.bf16 %v2599_v57, %v2598_v58  ;;  %v2601_v62 = vmul.f32 %v4041_v37, %v3985_v55 }
 0x55b   :  { %v2561_v61 = vpop.f32.mrf.mxu1 }
 0x55c   :  { %v2600_v38 = vmul.f32 %v2561_v61, %v2176_v60  ;;  %4086 = vmatprep.mubr.bf16.mxu0 %v2632_v59 }
 0x55e   :  { %v2633_v63 = vpack.c.bf16 %v2601_v62, %v2600_v38 }
 0x560   :  { %4087 = vmatmul.mubr.bf16.gmra.mxu0 %v2633_v63 }
 0x5e8   :  { %v4060_v1 = vpop.f32.mrf.mxu0 }
 0x5e9   :  { %v2732_v8 = vadd.f32 %v4060_v1, %v5365_v39 }
 0x5ea   :  { %v2723_v2 = vpop.f32.mrf.mxu0 }
 0x5eb   :  { %v2724_v6 = vadd.f32 %v5365_v39, %v2723_v2  ;;  %v2852_v17 = vmax.f32 %v2732_v8, 0.0 }
 0x5ec   :  { %v4061_v3 = vpop.f32.mrf.mxu0 }
 0x5ed   :  { %v2735_v9 = vadd.f32 %v4061_v3, %v5365_v39  ;;  %v2850_v14 = vmax.f32 %v2724_v6, 0.0 }
 0x5ee   :  { %v2726_v10 = vpop.f32.mrf.mxu0 }
 0x5ef   :  { %v2727_v40 = vadd.f32 %v5365_v39, %v2726_v10  ;;  %v2853_v11 = vmax.f32 %v2735_v9, 0.0 }
 0x5f0   :  { %v4064_v13 = vpop.f32.mrf.mxu0 }
 0x5f1   :  { %v2851_v16 = vmax.f32 %v2727_v40, 0.0  ;;  %v2899_v20 = vpack.c.bf16 %v2853_v11, %v2852_v17  ;;  %v2748_v22 = vadd.f32 %v4064_v13, %v5365_v39 }
 0x5f2   :  { %v2739_v18 = vpop.f32.mrf.mxu0 }
 0x5f3   :  { %v2898_v19 = vpack.c.bf16 %v2851_v16, %v2850_v14  ;;  %v2740_v12 = vadd.f32 %v5365_v39, %v2739_v18  ;;  %v2856_v43 = vmax.f32 %v2748_v22, 0.0 }
 0x5f4   :  { %v4065_v21 = vpop.f32.mrf.mxu0 }
 0x5f5   :  { %v2751_v15 = vadd.f32 %v4065_v21, %v5365_v39  ;;  %4106 = vmatprep.mubr.bf16.mxu1 %v2898_v19  ;;  %v2854_v25 = vmax.f32 %v2740_v12, 0.0 }
 0x5f6   :  { %v2742_v23 = vpop.f32.mrf.mxu0  ;;  %4107 = vmatmul.mubr.bf16.vlgmr.msra.gmra.mxu1 %v2899_v20 }
 0x5f7   :  { %v2743_v41 = vadd.f32 %v5365_v39, %v2742_v23  ;;  %v2857_v42 = vmax.f32 %v2751_v15, 0.0 }
 0x5f8   :  { %v4068_v24 = vpop.f32.mrf.mxu0 }
 0x5f9   :  { %v2855_v26 = vmax.f32 %v2743_v41, 0.0  ;;  %v2901_v27 = vpack.c.bf16 %v2857_v42, %v2856_v43  ;;  %v2764_v29 = vadd.f32 %v4068_v24, %v5365_v39 }
 0x5fa   :  { %v2755_v44 = vpop.f32.mrf.mxu0 }
 0x5fb   :  { %v2900_v4 = vpack.c.bf16 %v2855_v26, %v2854_v25  ;;  %v2756_v46 = vadd.f32 %v5365_v39, %v2755_v44  ;;  %v2860_v32 = vmax.f32 %v2764_v29, 0.0 }
 0x5fc   :  { %v4069_v45 = vpop.f32.mrf.mxu0 }
 0x5fd   :  { %v2767_v28 = vadd.f32 %v4069_v45, %v5365_v39  ;;  %4110 = vmatprep.mubr.bf16.mxu1 %v2900_v4  ;;  %v2858_v49 = vmax.f32 %v2756_v46, 0.0 }
 0x5fe   :  { %v2758_v47 = vpop.f32.mrf.mxu0  ;;  %4111 = vmatmul.mubr.bf16.gmra.mxu1 %v2901_v27 }
 0x5ff   :  { %v2759_v48 = vadd.f32 %v5365_v39, %v2758_v47  ;;  %v2861_v30 = vmax.f32 %v2767_v28, 0.0 }
 0x600   :  { %v4072_v31 = vpop.f32.mrf.mxu0 }
 0x601   :  { %v2859_v50 = vmax.f32 %v2759_v48, 0.0  ;;  %v2903_v52 = vpack.c.bf16 %v2861_v30, %v2860_v32  ;;  %v2780_v34 = vadd.f32 %v4072_v31, %v5365_v39 }
 0x602   :  { %v2771_v33 = vpop.f32.mrf.mxu0 }
 0x603   :  { %v2902_v51 = vpack.c.bf16 %v2859_v50, %v2858_v49  ;;  %v2772_v53 = vadd.f32 %v5365_v39, %v2771_v33  ;;  %v2864_v59 = vmax.f32 %v2780_v34, 0.0 }
 0x604   :  { %v4073_v54 = vpop.f32.mrf.mxu0 }
 0x605   :  { %v2783_v56 = vadd.f32 %v4073_v54, %v5365_v39  ;;  %4114 = vmatprep.mubr.bf16.mxu1 %v2902_v51  ;;  %v2862_v58 = vmax.f32 %v2772_v53, 0.0 }
 0x606   :  { %v2774_v35 = vpop.f32.mrf.mxu0  ;;  %4115 = vmatmul.mubr.bf16.gmra.mxu1 %v2903_v52 }
 0x607   :  { %v2775_v55 = vadd.f32 %v5365_v39, %v2774_v35  ;;  %v2865_v36 = vmax.f32 %v2783_v56, 0.0 }
 0x608   :  { %v4076_v57 = vpop.f32.mrf.mxu0 }
 0x609   :  { %v2863_v37 = vmax.f32 %v2775_v55, 0.0  ;;  %v2905_v62 = vpack.c.bf16 %v2865_v36, %v2864_v59  ;;  %v2796_v1 = vadd.f32 %v4076_v57, %v5365_v39  ;;  %v5402_v57 = vld [vmem:[%s5507_s26] sm:$0x1] }
 0x60a   :  { %v2787_v60 = vpop.f32.mrf.mxu0  ;;  %3706 = vmatprep.mubr.bf16.mxu0 %v5402_v57 }
 0x60b   :  { %v2904_v61 = vpack.c.bf16 %v2863_v37, %v2862_v58  ;;  %v2788_v63 = vadd.f32 %v5365_v39, %v2787_v60  ;;  %v2868_v40 = vmax.f32 %v2796_v1, 0.0 }
 0x60c   :  { %v4077_v38 = vpop.f32.mrf.mxu0 }
 0x60d   :  { %v2799_v0 = vadd.f32 %v4077_v38, %v5365_v39  ;;  %4118 = vmatprep.mubr.bf16.mxu1 %v2904_v61  ;;  %v2866_v8 = vmax.f32 %v2788_v63, 0.0 }
 0x60e   :  { %v2790_v2 = vpop.f32.mrf.mxu0  ;;  %4119 = vmatmul.mubr.bf16.gmra.mxu1 %v2905_v62 }
 0x60f   :  { %v2791_v3 = vadd.f32 %v5365_v39, %v2790_v2  ;;  %v2869_v6 = vmax.f32 %v2799_v0, 0.0 }
 0x610   :  { %v4080_v9 = vpop.f32.mrf.mxu0 }
 0x611   :  { %v2867_v10 = vmax.f32 %v2791_v3, 0.0  ;;  %v2907_v14 = vpack.c.bf16 %v2869_v6, %v2868_v40  ;;  %v2812_v19 = vadd.f32 %v4080_v9, %v5365_v39 }
 0x612   :  { %v2803_v11 = vpop.f32.mrf.mxu0 }
 0x613   :  { %v2906_v13 = vpack.c.bf16 %v2867_v10, %v2866_v8  ;;  %v2804_v17 = vadd.f32 %v5365_v39, %v2803_v11  ;;  %v2872_v41 = vmax.f32 %v2812_v19, 0.0 }
 0x614   :  { %v4081_v16 = vpop.f32.mrf.mxu0 }
 0x615   :  { %v2815_v18 = vadd.f32 %v4081_v16, %v5365_v39  ;;  %4122 = vmatprep.mubr.bf16.mxu1 %v2906_v13  ;;  %v2870_v22 = vmax.f32 %v2804_v17, 0.0 }
 0x616   :  { %v2806_v20 = vpop.f32.mrf.mxu0  ;;  %4123 = vmatmul.mubr.bf16.gmra.mxu1 %v2907_v14 }
 0x617   :  { %v2807_v21 = vadd.f32 %v5365_v39, %v2806_v20  ;;  %v2873_v12 = vmax.f32 %v2815_v18, 0.0 }
 0x618   :  { %v4084_v15 = vpop.f32.mrf.mxu0 }
 0x619   :  { %v2871_v23 = vmax.f32 %v2807_v21, 0.0  ;;  %v2909_v25 = vpack.c.bf16 %v2873_v12, %v2872_v41  ;;  %v2828_v4 = vadd.f32 %v4084_v15, %v5365_v39 }
 0x61a   :  { %v2819_v42 = vpop.f32.mrf.mxu0 }
 0x61b   :  { %v2908_v24 = vpack.c.bf16 %v2871_v23, %v2870_v22  ;;  %v2820_v43 = vadd.f32 %v5365_v39, %v2819_v42  ;;  %v2876_v48 = vmax.f32 %v2828_v4, 0.0 }
 0x61c   :  { %v4085_v26 = vpop.f32.mrf.mxu0 }
 0x61d   :  { %v2831_v44 = vadd.f32 %v4085_v26, %v5365_v39  ;;  %4126 = vmatprep.mubr.bf16.mxu1 %v2908_v24  ;;  %v2874_v29 = vmax.f32 %v2820_v43, 0.0 }
 0x61e   :  { %v2822_v27 = vpop.f32.mrf.mxu0  ;;  %4127 = vmatmul.mubr.bf16.gmra.mxu1 %v2909_v25 }
 0x61f   :  { %v2823_v45 = vadd.f32 %v5365_v39, %v2822_v27  ;;  %v2877_v46 = vmax.f32 %v2831_v44, 0.0 }
 0x620   :  { %v4088_v28 = vpop.f32.mrf.mxu0 }
 0x621   :  { %v2875_v47 = vmax.f32 %v2823_v45, 0.0  ;;  %v2911_v49 = vpack.c.bf16 %v2877_v46, %v2876_v48  ;;  %v2844_v51 = vadd.f32 %v4088_v28, %v5365_v39 }
 0x622   :  { %v2835_v30 = vpop.f32.mrf.mxu0 }
 0x623   :  { %v2910_v31 = vpack.c.bf16 %v2875_v47, %v2874_v29  ;;  %v2836_v32 = vadd.f32 %v5365_v39, %v2835_v30  ;;  %v2880_v35 = vmax.f32 %v2844_v51, 0.0 }
 0x624   :  { %v4089_v50 = vpop.f32.mrf.mxu0 }
 0x625   :  { %v2847_v33 = vadd.f32 %v4089_v50, %v5365_v39  ;;  %4130 = vmatprep.mubr.bf16.mxu1 %v2910_v31  ;;  %v2878_v56 = vmax.f32 %v2836_v32, 0.0 }
 0x626   :  { %v2838_v52 = vpop.f32.mrf.mxu0  ;;  %4131 = vmatmul.mubr.bf16.gmra.mxu1 %v2911_v49 }
 0x627   :  { %v2839_v54 = vadd.f32 %v5365_v39, %v2838_v52  ;;  %v2881_v53 = vmax.f32 %v2847_v33, 0.0  ;;  %v5408_v39 = vld [vmem:[%s5506_s25] ss:$0 sm:$0xff] }
 0x629   :  { %v2879_v34 = vmax.f32 %v2839_v54, 0.0  ;;  %v2913_v36 = vpack.c.bf16 %v2881_v53, %v2880_v35 }
 0x62b   :  { %v2912_v55 = vpack.c.bf16 %v2879_v34, %v2878_v56 }
 0x62d   :  { %4134 = vmatprep.mubr.bf16.mxu1 %v2912_v55 }
 0x62e   :  { %4135 = vmatmul.mubr.bf16.gmra.mxu1 %v2913_v36 }
 0x6b6   :  { %v4108_v58 = vpop.f32.mrf.mxu1 }
 0x6b7   :  { %v3012_v59 = vadd.f32 %v4108_v58, %v5408_v39 }
 0x6b8   :  { %v3003_v37 = vpop.f32.mrf.mxu1 }
 0x6b9   :  { %v3004_v61 = vadd.f32 %v5408_v39, %v3003_v37  ;;  %v3132_v63 = vmax.f32 %v3012_v59, 0.0 }
 0x6ba   :  { %v4109_v60 = vpop.f32.mrf.mxu1 }
 0x6bb   :  { %v3015_v62 = vadd.f32 %v4109_v60, %v5408_v39  ;;  %v3130_v3 = vmax.f32 %v3004_v61, 0.0 }
 0x6bc   :  { %v3006_v38 = vpop.f32.mrf.mxu1 }
 0x6bd   :  { %v3133_v0 = vmax.f32 %v3015_v62, 0.0  ;;  %v3007_v1 = vadd.f32 %v5408_v39, %v3006_v38 }
 0x6be   :  { %v4112_v2 = vpop.f32.mrf.mxu1 }
 0x6bf   :  { %v5414_v6 = vpack.c.bf16 %v3133_v0, %v3132_v63  ;;  %v3131_v9 = vmax.f32 %v3007_v1, 0.0  ;;  %v3028_v40 = vadd.f32 %v4112_v2, %v5408_v39 }
 0x6c0   :  { %v3019_v8 = vpop.f32.mrf.mxu1 }
 0x6c1   :  { %v5416_v10 = vpack.c.bf16 %v3131_v9, %v3130_v3  ;;  %v3020_v13 = vadd.f32 %v5408_v39, %v3019_v8  ;;  %v3136_v17 = vmax.f32 %v3028_v40, 0.0 }
 0x6c2   :  { %v4113_v11 = vpop.f32.mrf.mxu1 }
 0x6c3   :  { %v3031_v14 = vadd.f32 %v4113_v11, %v5408_v39  ;;  %v3134_v21 = vmax.f32 %v3020_v13, 0.0 }
 0x6c4   :  { %v3022_v16 = vpop.f32.mrf.mxu1 }
 0x6c5   :  { %v3137_v18 = vmax.f32 %v3031_v14, 0.0  ;;  %v3023_v19 = vadd.f32 %v5408_v39, %v3022_v16 }
 0x6c6   :  { %v5422_v20 = vpop.f32.mrf.mxu1 }
 0x6c7   :  { %v5424_v12 = vpack.c.bf16 %v3137_v18, %v3136_v17  ;;  %v3135_v15 = vmax.f32 %v3023_v19, 0.0 }
 0x6c8   :  { %v5426_v22 = vpop.f32.mrf.mxu1 }
 0x6c9   :  { %v5428_v23 = vpack.c.bf16 %v3135_v15, %v3134_v21 }
 0x6ca   :  { %v4117_v41 = vpop.f32.mrf.mxu1 }
 0x6cc   :  { %v5430_v42 = vpop.f32.mrf.mxu1 }
 0x6ce   :  { %v4120_v24 = vpop.f32.mrf.mxu1 }
 0x6cf   :  { %v3060_v59 = vadd.f32 %v4120_v24, %v5408_v39 }
 0x6d0   :  { %v3051_v25 = vpop.f32.mrf.mxu1 }
 0x6d1   :  { %v3144_v3 = vmax.f32 %v3060_v59, 0.0  ;;  %v3052_v17 = vadd.f32 %v5408_v39, %v3051_v25 }
 0x6d2   :  { %v4121_v26 = vpop.f32.mrf.mxu1 }
 0x6d3   :  { %v3063_v36 = vadd.f32 %v4121_v26, %v5408_v39  ;;  %v3142_v15 = vmax.f32 %v3052_v17, 0.0  ;;  %v3047_v26 = vadd.f32 %v4117_v41, %v5408_v39 }
 0x6d4   :  { %v3054_v43 = vpop.f32.mrf.mxu1 }
 0x6d5   :  { %v3145_v38 = vmax.f32 %v3063_v36, 0.0  ;;  %v3055_v13 = vadd.f32 %v5408_v39, %v3054_v43 }
 0x6d6   :  { %v4124_v44 = vpop.f32.mrf.mxu1 }
 0x6d7   :  { %v3076_v27 = vadd.f32 %v4124_v44, %v5408_v39  ;;  %v3170_v11 = vpack.c.bf16 %v3145_v38, %v3144_v3  ;;  %v3143_v19 = vmax.f32 %v3055_v13, 0.0 }
 0x6d8   :  { %v3067_v4 = vpop.f32.mrf.mxu1 }
 0x6d9   :  { %v3068_v46 = vadd.f32 %v5408_v39, %v3067_v4  ;;  %v3148_v47 = vmax.f32 %v3076_v27, 0.0  ;;  %v3169_v44 = vpack.c.bf16 %v3143_v19, %v3142_v15  ;;  %v3044_v27 = vadd.f32 %v5422_v20, %v5408_v39 }
 0x6da   :  { %v4125_v45 = vpop.f32.mrf.mxu1 }
 0x6db   :  { %v3079_v28 = vadd.f32 %v4125_v45, %v5408_v39  ;;  %v3146_v49 = vmax.f32 %v3068_v46, 0.0  ;;  %v3141_v45 = vmax.f32 %v3047_v26, 0.0 }
 0x6dc   :  { %v3070_v29 = vpop.f32.mrf.mxu1 }
 0x6dd   :  { %v3149_v48 = vmax.f32 %v3079_v28, 0.0  ;;  %v3071_v30 = vadd.f32 %v5408_v39, %v3070_v29  ;;  %v3140_v28 = vmax.f32 %v3044_v27, 0.0 }
 0x6de   :  { %v4128_v31 = vpop.f32.mrf.mxu1 }
 0x6df   :  { %v5436_v50 = vpack.c.bf16 %v3149_v48, %v3148_v47  ;;  %v3147_v32 = vmax.f32 %v3071_v30, 0.0  ;;  %v3168_v47 = vpack.c.bf16 %v3141_v45, %v3140_v28  ;;  %v3039_v48 = vadd.f32 %v5408_v39, %v5430_v42 }
 0x6e0   :  { %v5438_v33 = vpop.f32.mrf.mxu1  ;;  %v3092_v20 = vadd.f32 %v4128_v31, %v5408_v39 }
 0x6e1   :  { %v5440_v51 = vpack.c.bf16 %v3147_v32, %v3146_v49  ;;  %v3036_v49 = vadd.f32 %v5408_v39, %v5426_v22  ;;  %v3139_v32 = vmax.f32 %v3039_v48, 0.0  ;;  %v3084_v42 = vadd.f32 %v5408_v39, %v5438_v33 }
 0x6e2   :  { %v4129_v52 = vpop.f32.mrf.mxu1 }
 0x6e3   :  { %v3095_v41 = vadd.f32 %v4129_v52, %v5408_v39 }
 0x6e4   :  { %v3086_v54 = vpop.f32.mrf.mxu1 }
 0x6e5   :  { %v3087_v36 = vadd.f32 %v5408_v39, %v3086_v54 }
 0x6e6   :  { %v4132_v53 = vpop.f32.mrf.mxu1 }
 0x6e7   :  { %v3108_v18 = vadd.f32 %v4132_v53, %v5408_v39  ;;  %v3153_v53 = vmax.f32 %v3095_v41, 0.0  ;;  %v3151_v52 = vmax.f32 %v3087_v36, 0.0 }
 0x6e8   :  { %v3099_v56 = vpop.f32.mrf.mxu1 }
 0x6e9   :  { %v3156_v24 = vmax.f32 %v3108_v18, 0.0  ;;  %v3100_v25 = vadd.f32 %v5408_v39, %v3099_v56  ;;  %v3138_v56 = vmax.f32 %v3036_v49, 0.0 }
 0x6ea   :  { %v4133_v34 = vpop.f32.mrf.mxu1 }
 0x6eb   :  { %v3111_v14 = vadd.f32 %v4133_v34, %v5408_v39  ;;  %v3154_v29 = vmax.f32 %v3100_v25, 0.0  ;;  %v3152_v34 = vmax.f32 %v3092_v20, 0.0 }
 0x6ec   :  { %v3102_v35 = vpop.f32.mrf.mxu1 }
 0x6ed   :  { %v3157_v21 = vmax.f32 %v3111_v14, 0.0  ;;  %v3103_v43 = vadd.f32 %v5408_v39, %v3102_v35  ;;  %v3167_v35 = vpack.c.bf16 %v3139_v32, %v3138_v56 }
 0x6ee   :  { %v4136_v55 = vpop.f32.mrf.mxu1 }
 0x6ef   :  { %v3124_v37 = vadd.f32 %v4136_v55, %v5408_v39  ;;  %v3176_v4 = vpack.c.bf16 %v3157_v21, %v3156_v24  ;;  %v3155_v46 = vmax.f32 %v3103_v43, 0.0  ;;  %v3174_v55 = vpack.c.bf16 %v3153_v53, %v3152_v34 }
 0x6f0   :  { %v3115_v58 = vpop.f32.mrf.mxu1 }
 0x6f1   :  { %v3116_v61 = vadd.f32 %v5408_v39, %v3115_v58  ;;  %v3160_v0 = vmax.f32 %v3124_v37, 0.0  ;;  %v3175_v30 = vpack.c.bf16 %v3155_v46, %v3154_v29  ;;  %v3150_v58 = vmax.f32 %v3084_v42, 0.0 }
 0x6f2   :  { %v4137_v60 = vpop.f32.mrf.mxu1 }
 0x6f3   :  { %v3127_v62 = vadd.f32 %v4137_v60, %v5408_v39  ;;  %v3158_v9 = vmax.f32 %v3116_v61, 0.0  ;;  %v3173_v22 = vpack.c.bf16 %v3151_v52, %v3150_v58 }
 0x6f4   :  { %v3118_v63 = vpop.f32.mrf.mxu1 }
 0x6f5   :  { %v3161_v1 = vmax.f32 %v3127_v62, 0.0  ;;  %v3119_v2 = vadd.f32 %v5408_v39, %v3118_v63  ;;  %v4828_v39 = vmov 1966171168  }
 0x6f6   :  { %v3226_v31 = vunpack.c.l.s4 %v4828_v39 }
 0x6f7   :  { %v3178_v8 = vpack.c.bf16 %v3161_v1, %v3160_v0  ;;  %v3159_v40 = vmax.f32 %v3119_v2, 0.0 }
 0x6f8   :  { %v3227_v33 = vunpack.c.0.s8 %v3226_v31 }
 0x6f9   :  { %v3177_v16 = vpack.c.bf16 %v3159_v40, %v3158_v9  ;;  %3690 = vmatprep.subr.bf16.mxu0 %v3178_v8 }
 0x6fa   :  { %3691 = vmatpush3.bf16.xpose.msra.mxu0 %v3170_v11 }
 0x6fb   :  { %3692 = vmatprep.subr.bf16.mxu0 %v3177_v16 }
 0x702   :  { %3693 = vmatpush3.bf16.xpose.msra.mxu0 %v3169_v44 }
 0x703   :  { %3694 = vmatprep.subr.bf16.mxu0 %v3176_v4 }
 0x70a   :  { %3695 = vmatpush3.bf16.xpose.msra.mxu0 %v3168_v47 }
 0x70b   :  { %3696 = vmatprep.subr.bf16.mxu0 %v3175_v30 }
 0x712   :  { %3697 = vmatpush3.bf16.xpose.msra.mxu0 %v3167_v35 }
 0x713   :  { %3698 = vmatprep.subr.bf16.mxu0 %v3174_v55 }
 0x71a   :  { %3699 = vmatpush3.bf16.xpose.msra.mxu0 %v5424_v12  ;;  %v3180_v12 = vstv %s5508_s27 }
 0x71b   :  { %3700 = vmatprep.subr.bf16.mxu0 %v3173_v22 }
 0x722   :  { %3701 = vmatpush3.bf16.xpose.msra.mxu0 %v5428_v23 }
 0x723   :  { %3702 = vmatprep.subr.bf16.mxu0 %v5436_v50  ;;  %v3230_v50 = vsub.s32 %v3227_v33, %v5147_v7 }
 0x72a   :  { %3703 = vmatpush3.bf16.xpose.msra.mxu0 %v5414_v6 }
 0x72b   :  { %3704 = vmatprep.subr.bf16.mxu0 %v5440_v51 }
 0x732   :  { %3705 = vmatpush3.bf16.xpose.msra.mxu0 %v5416_v10 }
 0x739   :  { %3707 = vmatmul.mubr.bf16.vlgmr.msra.gmra.mxu0 %v5402_v57 }
 0x7f9   :  { %v3215_v54 = vpop.f32.mrf.mxu0 }
 0x7fa   :  { %v3216_v23 = vadd.f32 %v3215_v54, %v3180_v12 }
 0x7fb   :  { %v3217_v37 = vpop.f32.mrf.mxu0 }
 0x7fc   :  { %v3218_v59 = vadd.f32 %v3217_v37, %v3180_v12 }
 0x7fd   :  { %v3219_v6 = vpop.f32.mrf.mxu0 }
 0x7fe   :  { %v3224_v60 = vcombine.low %v3216_v23, %v3218_v59 }
 0x7ff   :  { %v3220_v51 = vpop.f32.mrf.mxu0 }
 0x800   :  { %v3231_v10 = vrot.slane %v3224_v60, %v3230_v50 }
 0x802   :  { %v3238_v57 = vrot.slane %v3231_v10, %v3230_v50 }
 0x804   :  { %3244 = vst.msk [vmem:[#allocation30] sm:$0x3] %vm3242_vm0, %v3238_v57 }
 0x805   :  { %4777 = shalt.err (!%p4774_p5)
}
 0x806   :  { %3254 = dma.vmem_to_hbm [thread:$0]  %s3252_s7, 32, %s5509_s28, [#allocation5]  }
 0x807   :  { %4804 = dma.done.wait [#allocation5], 32  }
 0x808   :  { %4805 = vsyncadd [#allocation5], 4294967264 }
 0x809   :  { %3258 = vsyncpa [#allocation4], 1 }
 0x80a   :  { %3259 = vsyncpa [#allocation7], 1 }
 0x80b   :  { %3260 = vsyncpa [#allocation10], 1 }
 0x80c   :  { %3261 = vsyncpa [#allocation13], 1 }
 0x80d   :  { %3262 = vsyncpa [#allocation16], 1 }
 0x80e   :  { %3263 = vsyncpa [#allocation19], 1 }
 0x80f   :  { %3264 = vsyncpa [#allocation22], 1 }
 0x810   :  { %3265 = vsyncpa [#allocation25], 1 }
 0x811   :  { %3266 = vsyncpa [#allocation28], 1 }
 0x812   :  { %3267 = vsyncpa [#allocation5], 1 }

</bundles_post_ra>
